<compile_context>
chip_gen: v7x
topology: tpu7x:2x2x1
jax: 0.10.0
libtpu: 0.0.40
codegen_flags: <defaults>
</compile_context>

<pallas_src>
import functools

import jax
import jax.numpy as jnp
import numpy as np
from jax.experimental import pallas as pl
from jax.experimental.pallas import tpu as pltpu

MIN_VISIBILITY = 0.001  # matches Loss.__init__ default


def _round_up(x, m):
    return ((x + m - 1) // m) * m


def _cdiv(a, b):
    return -(-a // b)


def _loss_kernel(net_ref, warp_ref, gt_ref, mask_ref, nrm_ref,
                 partials_ref, valids_ref, *, nsrc, n_eik, npx, tpx):
    """One pixel tile (tpx lanes).

    net_ref / warp_ref : (3*nsrc, tpx)   channel-major slabs (row = c*nsrc + src)
    gt_ref             : (3, tpx)
    mask_ref           : (2*nsrc, tpx)   rows [0:nsrc]=warping, [nsrc:]=occlusion
    nrm_ref            : (3*n_eik, tpx)  channel-major (row = c*n_eik + k)
    partials_ref       : (8, 128) f32    rows 0..3 = net / warp / eik / mask tile sums
    valids_ref         : (1, tpx) f32    per-pixel valid mask (1.0 / 0.0)
    """
    f32 = jnp.float32

    # The grid may be ragged along the pixel (lane) axis: OOB lanes of the last
    # block contain undefined data, so every quantity is masked with px_ok
    # before any cross-lane reduction.
    lane = jax.lax.broadcasted_iota(jnp.int32, (1, tpx), 1)
    px_ok = (pl.program_id(0) * tpx + lane) < npx                       # (1, tpx)

    wm = mask_ref[pl.ds(0, nsrc), :].astype(f32)
    om = mask_ref[pl.ds(nsrc, nsrc), :].astype(f32)
    mask = wm * (1.0 - om)                                              # (nsrc, tpx)

    # network-rgb abs diff and channel-summed warped abs diff (reassociated so
    # the mask multiply happens once, on the channel-summed diff).  gt rows
    # broadcast (1,tpx)->(nsrc,tpx) implicitly in the subtraction.
    net_acc = jnp.zeros((nsrc, tpx), f32)
    d = jnp.zeros((nsrc, tpx), f32)
    for c in range(3):                                  # static unroll, 3 channels
        gt_c = gt_ref[pl.ds(c, 1), :].astype(f32)                       # (1, tpx)
        net_acc = net_acc + jnp.abs(net_ref[pl.ds(c * nsrc, nsrc), :].astype(f32) - gt_c)
        d = d + jnp.abs(warp_ref[pl.ds(c * nsrc, nsrc), :].astype(f32) - gt_c)

    denom = jnp.sum(mask, axis=0, keepdims=True)                        # (1, tpx)
    num = jnp.sum(mask * d, axis=0, keepdims=True)                      # (1, tpx)
    valids = denom > MIN_VISIBILITY                                     # (1, tpx)
    sel = jnp.logical_and(valids, px_ok)
    per_px = jnp.where(sel, num / jnp.where(sel, denom, 1.0), 0.0)      # (1, tpx)

    net_lane = jnp.where(px_ok, jnp.sum(net_acc, axis=0, keepdims=True), 0.0)
    mask_lane = jnp.where(px_ok, denom, 0.0)

    # ---- eikonal regularization ----
    sq = jnp.zeros((n_eik, tpx), f32)
    for c in range(3):
        nc = nrm_ref[pl.ds(c * n_eik, n_eik), :].astype(f32)
        sq = sq + nc * nc
    e_lane = jnp.where(
        px_ok, jnp.sum((jnp.sqrt(sq) - 1.0) ** 2, axis=0, keepdims=True), 0.0)

    net_sum = jnp.sum(net_lane)
    warp_sum = jnp.sum(per_px)
    eik_sum = jnp.sum(e_lane)
    mask_sum = jnp.sum(mask_lane)

    # ---- outputs ----
    valids_ref[...] = jnp.where(valids, 1.0, 0.0).astype(valids_ref.dtype)

    # Scatter the four tile sums into rows 0..3 of the (8,128) partials block
    # (a handful of VALU selects on a single vreg; negligible next to the DMA).
    sub = jax.lax.broadcasted_iota(jnp.int32, (8, 128), 0)
    partials_ref[...] = jnp.where(
        sub == 0, net_sum,
        jnp.where(sub == 1, warp_sum,
                  jnp.where(sub == 2, eik_sum,
                            jnp.where(sub == 3, mask_sum, f32(0.0)))))


def _bilinear_sample(img, uv):
    """sample_2d_grid equivalent (bilinear). img: (3,H,W); uv: (npx,2) -> (3, npx)."""
    _, H, W = img.shape
    x = uv[:, 0]
    y = uv[:, 1]
    x0 = jnp.floor(x)
    y0 = jnp.floor(y)
    wx = x - x0
    wy = y - y0
    x0i = jnp.clip(x0, 0, W - 1).astype(jnp.int32)
    x1i = jnp.clip(x0 + 1, 0, W - 1).astype(jnp.int32)
    y0i = jnp.clip(y0, 0, H - 1).astype(jnp.int32)
    y1i = jnp.clip(y0 + 1, 0, H - 1).astype(jnp.int32)

    def g(yi, xi):
        return img[:, yi, xi]  # (3, npx)

    return (g(y0i, x0i) * ((1 - wx) * (1 - wy))
            + g(y0i, x1i) * (wx * (1 - wy))
            + g(y1i, x0i) * ((1 - wx) * wy)
            + g(y1i, x1i) * (wx * wy))


def loss_forward_slabs(imgs, uv, network_rgb_cm, warped_rgb_cm, mask_cm,
                       eikonal_normals_cm, *, warping_weight=1.0,
                       network_weight=1.0, eikonal_regularization=0.1,
                       tile_px=16384):
    """Forward pass of `Loss` (pixel-loss path) on channel-major slabs.

    Recommended producer-side layout (no HBM->HBM relayout needed):
      network_rgb_cm / warped_rgb_cm : (3*nsrc, npx)   row = channel*nsrc + src
      mask_cm                        : (2*nsrc, npx)   rows [0:nsrc]=warping mask,
                                                       rows [nsrc:]=occlusion mask
      eikonal_normals_cm             : (3*n_eik, npx)  row = channel*n_eik + k
      imgs: (1, nimgs, 3, H, W)   uv: (1, npx, 2)
    Inputs may be bf16 (the kernel upcasts in-register).
    """
    num_pixels = uv.shape[1]
    nsrc = mask_cm.shape[0] // 2
    npx = network_rgb_cm.shape[1]
    n_eik = eikonal_normals_cm.shape[0] // 3
    assert network_rgb_cm.shape[0] == 3 * nsrc
    assert warped_rgb_cm.shape == network_rgb_cm.shape
    assert num_pixels == npx

    # --- glue: ground-truth colours, produced channel-major (3, npx) directly ---
    gt_cm = _bilinear_sample(imgs[0, 0], uv[0])                         # (3, npx)

    # --- pixel tiling over the lane axis (ragged last tile handled in-kernel) ---
    rows_vmem = (2 * _round_up(3 * nsrc, 8) + 8
                 + _round_up(2 * nsrc, 8) + _round_up(3 * n_eik, 8))
    # double-buffered inputs + allowance for in-kernel temporaries / outputs
    per_lane_bytes = 3 * rows_vmem * 4 + 64
    vmem_budget = 24 * 1024 * 1024          # conservative across v5e/v6e/v7x(64 MiB)
    tpx_budget = max(128, (vmem_budget // per_lane_bytes) // 128 * 128)

    tile_px = max(128, (int(tile_px) // 128) * 128)
    tpx = min(tile_px, _round_up(npx, 128), tpx_budget)
    # Guarantee >= 2 grid steps when possible so the "parallel" axis can shard
    # across both v7x TensorCores (harmless extra ~0.35us step on 1-TC chips).
    if _cdiv(npx, tpx) == 1 and npx > 128:
        tpx = _round_up(_cdiv(npx, 2), 128)
    num_tiles = _cdiv(npx, tpx)

    vmem_limit = int(min(56 * 1024 * 1024,
                         max(32 * 1024 * 1024,
                             per_lane_bytes * tpx + 4 * 1024 * 1024)))

    kernel = functools.partial(_loss_kernel, nsrc=nsrc, n_eik=n_eik,
                               npx=npx, tpx=tpx)

    partials, valids_f = pl.pallas_call(
        kernel,
        out_shape=(
            jax.ShapeDtypeStruct((num_tiles * 8, 128), jnp.float32),  # per-tile partials
            jax.ShapeDtypeStruct((1, npx), jnp.float32),              # valid_warp mask
        ),
        grid=(num_tiles,),
        in_specs=[
            pl.BlockSpec((3 * nsrc, tpx), lambda i: (0, i)),
            pl.BlockSpec((3 * nsrc, tpx), lambda i: (0, i)),
            pl.BlockSpec((3, tpx), lambda i: (0, i)),
            pl.BlockSpec((2 * nsrc, tpx), lambda i: (0, i)),
            pl.BlockSpec((3 * n_eik, tpx), lambda i: (0, i)),
        ],
        out_specs=(
            pl.BlockSpec((8, 128), lambda i: (i, 0)),
            pl.BlockSpec((1, tpx), lambda i: (0, i)),
        ),
        compiler_params=pltpu.CompilerParams(
            dimension_semantics=("parallel",),
            vmem_limit_bytes=vmem_limit,
        ),
    )(network_rgb_cm, warped_rgb_cm, gt_cm, mask_cm, eikonal_normals_cm)

    # --- reduce per-tile partials in plain JAX (f32) ---
    p = partials.reshape(num_tiles, 8, 128)
    net_total = jnp.sum(p[:, 0, 0])
    warp_total = jnp.sum(p[:, 1, 0])
    eik_total = jnp.sum(p[:, 2, 0])
    mask_total = jnp.sum(p[:, 3, 0])

    empty = mask_total == 0.0          # masked_pixel_loss "warp_mask.sum() == 0" case
    network_rgb_loss = net_total / nsrc / num_pixels
    warped_rgb_loss = jnp.where(empty, 0.0, warp_total) / num_pixels
    eikonal_loss = eik_total / n_eik / num_pixels

    valid_warp = jnp.where(empty, jnp.ones((npx,), jnp.float32), valids_f[0])

    loss = (network_weight * network_rgb_loss
            + warping_weight * warped_rgb_loss
            + eikonal_regularization * eikonal_loss)

    return {
        'network_rgb_loss': network_rgb_loss,
        'warped_rgb_loss': warped_rgb_loss,
        'eikonal_loss': eikonal_loss,
        'valid_warp': valid_warp,
        'loss': loss,
    }


def _rgb_to_channel_major(x):
    """(npx, a, 3) -> (3*a, npx), row = channel*a + idx."""
    a = x.shape[1]
    return jnp.transpose(x, (2, 1, 0)).reshape(3 * a, x.shape[0])


def loss_forward(imgs, uv, network_rgb_values, warped_rgb_values, warping_mask,
                 occlusion_mask, eikonal_normals, **kwargs):
    """Compatibility adapter taking the original pixel-major PyTorch layouts.

    imgs: (1, nimgs, 3, H, W)   uv: (1, npx, 2)
    network_rgb_values / warped_rgb_values: (npx, nsrc, 3)
    warping_mask / occlusion_mask: (npx, nsrc)
    eikonal_normals: (npx, n_eik, 3)

    This path pays one fused transpose per tensor (an HBM->HBM pass roughly as
    large as the kernel's own reads).  Prefer `loss_forward_slabs` with the
    producer emitting channel-major slabs directly.
    """
    if occlusion_mask is None:
        occlusion_mask = jnp.zeros_like(warping_mask)
    net_cm = _rgb_to_channel_major(network_rgb_values)
    warp_cm = _rgb_to_channel_major(warped_rgb_values)
    mask_cm = jnp.concatenate([jnp.transpose(warping_mask, (1, 0)),
                               jnp.transpose(occlusion_mask, (1, 0))], axis=0)
    nrm_cm = _rgb_to_channel_major(eikonal_normals)
    return loss_forward_slabs(imgs, uv, net_cm, warp_cm, mask_cm, nrm_cm, **kwargs)


def _reference(imgs, uv, net_rgb, warped, wm, om, normals, *,
               warping_weight, network_weight, eikonal_regularization):
    """Plain-JAX transcription of the PyTorch forward (pixel-loss path)."""
    npx, nsrc, _ = warped.shape
    gt = _bilinear_sample(imgs[0, 0], uv[0]).T                     # (npx, 3)
    net_loss = jnp.sum(jnp.abs(net_rgb - gt[:, None, :])) / nsrc / npx
    mask = wm * (1.0 - om)
    num = jnp.sum(mask[:, :, None] * jnp.abs(warped - gt[:, None, :]), axis=1).sum(axis=1)
    denom = jnp.sum(mask, axis=1)
    valids = denom > MIN_VISIBILITY
    rgb_loss = jnp.sum(jnp.where(valids, num / jnp.where(valids, denom, 1.0), 0.0))
    empty = jnp.sum(mask) == 0.0
    rgb_loss = jnp.where(empty, 0.0, rgb_loss) / npx
    eik = jnp.sum((jnp.linalg.norm(normals, axis=-1) - 1.0) ** 2) / normals.shape[1] / npx
    valid_warp = jnp.where(empty, jnp.ones_like(denom), valids.astype(jnp.float32))
    loss = (network_weight * net_loss + warping_weight * rgb_loss
            + eikonal_regularization * eik)
    return {'network_rgb_loss': net_loss, 'warped_rgb_loss': rgb_loss,
            'eikonal_loss': eik, 'valid_warp': valid_warp, 'loss': loss}


if __name__ == "__main__":
    key = jax.random.PRNGKey(0)
    nimgs, C, H, W = 5, 3, 16, 16
    npx = 300          # deliberately not a multiple of 128: exercises the ragged tile
    nsrc = nimgs - 1
    n_eik = 8

    k = jax.random.split(key, 7)
    imgs = jax.random.uniform(k[0], (1, nimgs, C, H, W), jnp.float32)
    uv = jax.random.uniform(k[1], (1, npx, 2), jnp.float32, 0.0, float(W - 1))
    network_rgb = jax.random.uniform(k[2], (npx, nsrc, 3), jnp.float32)
    warped_rgb = jax.random.uniform(k[3], (npx, nsrc, 3), jnp.float32)
    warping_mask = (jax.random.uniform(k[4], (npx, nsrc)) > 0.3).astype(jnp.float32)
    occlusion_mask = jax.random.uniform(k[5], (npx, nsrc), jnp.float32)
    eikonal_normals = jax.random.normal(k[6], (npx, n_eik, 3), jnp.float32)

    weights = dict(warping_weight=1.0, network_weight=0.5, eikonal_regularization=0.1)

    # Compatibility path (original pixel-major PyTorch layouts).
    fn = jax.jit(functools.partial(loss_forward, **weights))
    res = fn(imgs, uv, network_rgb, warped_rgb, warping_mask, occlusion_mask,
             eikonal_normals)
    jax.block_until_ready(res)

    # Recommended path: producer emits channel-major slabs (no relayout pass).
    net_cm = _rgb_to_channel_major(network_rgb)
    warp_cm = _rgb_to_channel_major(warped_rgb)
    mask_cm = jnp.concatenate([warping_mask.T, occlusion_mask.T], axis=0)
    nrm_cm = _rgb_to_channel_major(eikonal_normals)
    fn_slab = jax.jit(functools.partial(loss_forward_slabs, **weights))
    res_slab = fn_slab(imgs, uv, net_cm, warp_cm, mask_cm, nrm_cm)
    jax.block_until_ready(res_slab)

    ref = _reference(imgs, uv, network_rgb, warped_rgb, warping_mask,
                     occlusion_mask, eikonal_normals, **weights)

    for out, tag in ((res, 'compat'), (res_slab, 'slab')):
        for name in ('network_rgb_loss', 'warped_rgb_loss', 'eikonal_loss', 'loss'):
            a = np.asarray(out[name])
            b = np.asarray(ref[name])
            if not np.allclose(a, b, rtol=1e-4, atol=1e-5):
                raise RuntimeError(f"[{tag}] mismatch in {name}: kernel={a} ref={b}")
        if not np.array_equal(np.asarray(out['valid_warp']),
                              np.asarray(ref['valid_warp'])):
            raise RuntimeError(f"[{tag}] mismatch in valid_warp")

    print("KERNEL_OK")
</pallas_src>

<mosaic_0001>
module attributes {stable_mosaic.version = 11 : i64} {
  func.func @_loss_kernel(%arg0: i32, %arg1: memref<12x256xf32, #tpu.memory_space<vmem>>, %arg2: memref<12x256xf32, #tpu.memory_space<vmem>>, %arg3: memref<3x256xf32, #tpu.memory_space<vmem>>, %arg4: memref<8x256xf32, #tpu.memory_space<vmem>>, %arg5: memref<24x256xf32, #tpu.memory_space<vmem>>, %arg6: memref<8x128xf32, #tpu.memory_space<vmem>>, %arg7: memref<1x256xf32, #tpu.memory_space<vmem>>) attributes {dimension_semantics = [#tpu.dimension_semantics<parallel>], iteration_bounds = array<i64: 2>, scalar_prefetch = 0 : i64, scratch_operands = 0 : i64, tpu.core_type = #tpu.core_type<tc>, window_params = [{transform_indices = @transform_0, window_bounds = array<i64: 12, 256>}, {transform_indices = @transform_1, window_bounds = array<i64: 12, 256>}, {transform_indices = @transform_2, window_bounds = array<i64: 3, 256>}, {transform_indices = @transform_3, window_bounds = array<i64: 8, 256>}, {transform_indices = @transform_4, window_bounds = array<i64: 24, 256>}, {transform_indices = @transform_5, window_bounds = array<i64: 8, 128>}, {transform_indices = @transform_6, window_bounds = array<i64: 1, 256>}]} {
    %0 = tpu.iota {dimensions = array<i32: 1>} : vector<1x256xi32>
    %c256_i32 = arith.constant 256 : i32
    %1 = arith.muli %arg0, %c256_i32 : i32
    %2 = vector.broadcast %1 : i32 to vector<1x256xi32>
    %3 = arith.addi %2, %0 : vector<1x256xi32>
    %c300_i32 = arith.constant 300 : i32
    %4 = vector.broadcast %c300_i32 : i32 to vector<1x256xi32>
    %5 = arith.cmpi slt, %3, %4 : vector<1x256xi32>
    %c0 = arith.constant 0 : index
    %c0_0 = arith.constant 0 : index
    %6 = vector.load %arg4[%c0, %c0_0] : memref<8x256xf32, #tpu.memory_space<vmem>>, vector<4x256xf32>
    %c4 = arith.constant 4 : index
    %c0_1 = arith.constant 0 : index
    %7 = vector.load %arg4[%c4, %c0_1] : memref<8x256xf32, #tpu.memory_space<vmem>>, vector<4x256xf32>
    %cst = arith.constant 1.000000e+00 : f32
    %8 = vector.broadcast %cst : f32 to vector<4x256xf32>
    %9 = arith.subf %8, %7 : vector<4x256xf32>
    %10 = arith.mulf %6, %9 : vector<4x256xf32>
    %cst_2 = arith.constant 0.000000e+00 : f32
    %11 = vector.broadcast %cst_2 : f32 to vector<4x256xf32>
    %cst_3 = arith.constant 0.000000e+00 : f32
    %12 = vector.broadcast %cst_3 : f32 to vector<4x256xf32>
    %c0_4 = arith.constant 0 : index
    %c0_5 = arith.constant 0 : index
    %13 = vector.load %arg3[%c0_4, %c0_5] : memref<3x256xf32, #tpu.memory_space<vmem>>, vector<1x256xf32>
    %c0_6 = arith.constant 0 : index
    %c0_7 = arith.constant 0 : index
    %14 = vector.load %arg1[%c0_6, %c0_7] : memref<12x256xf32, #tpu.memory_space<vmem>>, vector<4x256xf32>
    %15 = vector.broadcast %13 : vector<1x256xf32> to vector<4x256xf32>
    %16 = arith.subf %14, %15 : vector<4x256xf32>
    %17 = math.absf %16 : vector<4x256xf32>
    %18 = arith.addf %11, %17 : vector<4x256xf32>
    %c0_8 = arith.constant 0 : index
    %c0_9 = arith.constant 0 : index
    %19 = vector.load %arg2[%c0_8, %c0_9] : memref<12x256xf32, #tpu.memory_space<vmem>>, vector<4x256xf32>
    %20 = vector.broadcast %13 : vector<1x256xf32> to vector<4x256xf32>
    %21 = arith.subf %19, %20 : vector<4x256xf32>
    %22 = math.absf %21 : vector<4x256xf32>
    %23 = arith.addf %12, %22 : vector<4x256xf32>
    %c1 = arith.constant 1 : index
    %c0_10 = arith.constant 0 : index
    %24 = vector.load %arg3[%c1, %c0_10] : memref<3x256xf32, #tpu.memory_space<vmem>>, vector<1x256xf32>
    %c4_11 = arith.constant 4 : index
    %c0_12 = arith.constant 0 : index
    %25 = vector.load %arg1[%c4_11, %c0_12] : memref<12x256xf32, #tpu.memory_space<vmem>>, vector<4x256xf32>
    %26 = vector.broadcast %24 : vector<1x256xf32> to vector<4x256xf32>
    %27 = arith.subf %25, %26 : vector<4x256xf32>
    %28 = math.absf %27 : vector<4x256xf32>
    %29 = arith.addf %18, %28 : vector<4x256xf32>
    %c4_13 = arith.constant 4 : index
    %c0_14 = arith.constant 0 : index
    %30 = vector.load %arg2[%c4_13, %c0_14] : memref<12x256xf32, #tpu.memory_space<vmem>>, vector<4x256xf32>
    %31 = vector.broadcast %24 : vector<1x256xf32> to vector<4x256xf32>
    %32 = arith.subf %30, %31 : vector<4x256xf32>
    %33 = math.absf %32 : vector<4x256xf32>
    %34 = arith.addf %23, %33 : vector<4x256xf32>
    %c2 = arith.constant 2 : index
    %c0_15 = arith.constant 0 : index
    %35 = vector.load %arg3[%c2, %c0_15] : memref<3x256xf32, #tpu.memory_space<vmem>>, vector<1x256xf32>
    %c8 = arith.constant 8 : index
    %c0_16 = arith.constant 0 : index
    %36 = vector.load %arg1[%c8, %c0_16] : memref<12x256xf32, #tpu.memory_space<vmem>>, vector<4x256xf32>
    %37 = vector.broadcast %35 : vector<1x256xf32> to vector<4x256xf32>
    %38 = arith.subf %36, %37 : vector<4x256xf32>
    %39 = math.absf %38 : vector<4x256xf32>
    %40 = arith.addf %29, %39 : vector<4x256xf32>
    %c8_17 = arith.constant 8 : index
    %c0_18 = arith.constant 0 : index
    %41 = vector.load %arg2[%c8_17, %c0_18] : memref<12x256xf32, #tpu.memory_space<vmem>>, vector<4x256xf32>
    %42 = vector.broadcast %35 : vector<1x256xf32> to vector<4x256xf32>
    %43 = arith.subf %41, %42 : vector<4x256xf32>
    %44 = math.absf %43 : vector<4x256xf32>
    %45 = arith.addf %34, %44 : vector<4x256xf32>
    %cst_19 = arith.constant dense<0.000000e+00> : vector<256xf32>
    %46 = vector.multi_reduction <add>, %10, %cst_19 [0] : vector<4x256xf32> to vector<256xf32>
    %47 = vector.shape_cast %46 : vector<256xf32> to vector<1x256xf32>
    %48 = arith.mulf %10, %45 : vector<4x256xf32>
    %cst_20 = arith.constant dense<0.000000e+00> : vector<256xf32>
    %49 = vector.multi_reduction <add>, %48, %cst_20 [0] : vector<4x256xf32> to vector<256xf32>
    %50 = vector.shape_cast %49 : vector<256xf32> to vector<1x256xf32>
    %cst_21 = arith.constant 1.000000e-03 : f32
    %51 = vector.broadcast %cst_21 : f32 to vector<1x256xf32>
    %52 = arith.cmpf ogt, %47, %51 : vector<1x256xf32>
    %53 = arith.andi %52, %5 : vector<1x256xi1>
    %cst_22 = arith.constant 1.000000e+00 : f32
    %54 = vector.broadcast %cst_22 : f32 to vector<1x256xf32>
    %55 = arith.select %53, %47, %54 : vector<1x256xi1>, vector<1x256xf32>
    %56 = arith.divf %50, %55 : vector<1x256xf32>
    %cst_23 = arith.constant 0.000000e+00 : f32
    %57 = vector.broadcast %cst_23 : f32 to vector<1x256xf32>
    %58 = arith.select %53, %56, %57 : vector<1x256xi1>, vector<1x256xf32>
    %cst_24 = arith.constant dense<0.000000e+00> : vector<256xf32>
    %59 = vector.multi_reduction <add>, %40, %cst_24 [0] : vector<4x256xf32> to vector<256xf32>
    %60 = vector.shape_cast %59 : vector<256xf32> to vector<1x256xf32>
    %cst_25 = arith.constant 0.000000e+00 : f32
    %61 = vector.broadcast %cst_25 : f32 to vector<1x256xf32>
    %62 = arith.select %5, %60, %61 : vector<1x256xi1>, vector<1x256xf32>
    %cst_26 = arith.constant 0.000000e+00 : f32
    %63 = vector.broadcast %cst_26 : f32 to vector<1x256xf32>
    %64 = arith.select %5, %47, %63 : vector<1x256xi1>, vector<1x256xf32>
    %cst_27 = arith.constant 0.000000e+00 : f32
    %65 = vector.broadcast %cst_27 : f32 to vector<8x256xf32>
    %c0_28 = arith.constant 0 : index
    %c0_29 = arith.constant 0 : index
    %66 = vector.load %arg5[%c0_28, %c0_29] : memref<24x256xf32, #tpu.memory_space<vmem>>, vector<8x256xf32>
    %67 = arith.mulf %66, %66 : vector<8x256xf32>
    %68 = arith.addf %65, %67 : vector<8x256xf32>
    %c8_30 = arith.constant 8 : index
    %c0_31 = arith.constant 0 : index
    %69 = vector.load %arg5[%c8_30, %c0_31] : memref<24x256xf32, #tpu.memory_space<vmem>>, vector<8x256xf32>
    %70 = arith.mulf %69, %69 : vector<8x256xf32>
    %71 = arith.addf %68, %70 : vector<8x256xf32>
    %c16 = arith.constant 16 : index
    %c0_32 = arith.constant 0 : index
    %72 = vector.load %arg5[%c16, %c0_32] : memref<24x256xf32, #tpu.memory_space<vmem>>, vector<8x256xf32>
    %73 = arith.mulf %72, %72 : vector<8x256xf32>
    %74 = arith.addf %71, %73 : vector<8x256xf32>
    %75 = math.sqrt %74 : vector<8x256xf32>
    %cst_33 = arith.constant 1.000000e+00 : f32
    %76 = vector.broadcast %cst_33 : f32 to vector<8x256xf32>
    %77 = arith.subf %75, %76 : vector<8x256xf32>
    %78 = arith.mulf %77, %77 : vector<8x256xf32>
    %cst_34 = arith.constant dense<0.000000e+00> : vector<256xf32>
    %79 = vector.multi_reduction <add>, %78, %cst_34 [0] : vector<8x256xf32> to vector<256xf32>
    %80 = vector.shape_cast %79 : vector<256xf32> to vector<1x256xf32>
    %cst_35 = arith.constant 0.000000e+00 : f32
    %81 = vector.broadcast %cst_35 : f32 to vector<1x256xf32>
    %82 = arith.select %5, %80, %81 : vector<1x256xi1>, vector<1x256xf32>
    %83 = vector.shape_cast %62 : vector<1x256xf32> to vector<1x1x256xf32>
    %cst_36 = arith.constant dense<0.000000e+00> : vector<1xf32>
    %84 = vector.multi_reduction <add>, %83, %cst_36 [1, 2] : vector<1x1x256xf32> to vector<1xf32>
    %85 = vector.shape_cast %84 : vector<1xf32> to vector<1x1x1xf32>
    %86 = vector.extract %85[0, 0, 0] : f32 from vector<1x1x1xf32>
    %87 = vector.shape_cast %58 : vector<1x256xf32> to vector<1x1x256xf32>
    %cst_37 = arith.constant dense<0.000000e+00> : vector<1xf32>
    %88 = vector.multi_reduction <add>, %87, %cst_37 [1, 2] : vector<1x1x256xf32> to vector<1xf32>
    %89 = vector.shape_cast %88 : vector<1xf32> to vector<1x1x1xf32>
    %90 = vector.extract %89[0, 0, 0] : f32 from vector<1x1x1xf32>
    %91 = vector.shape_cast %82 : vector<1x256xf32> to vector<1x1x256xf32>
    %cst_38 = arith.constant dense<0.000000e+00> : vector<1xf32>
    %92 = vector.multi_reduction <add>, %91, %cst_38 [1, 2] : vector<1x1x256xf32> to vector<1xf32>
    %93 = vector.shape_cast %92 : vector<1xf32> to vector<1x1x1xf32>
    %94 = vector.extract %93[0, 0, 0] : f32 from vector<1x1x1xf32>
    %95 = vector.shape_cast %64 : vector<1x256xf32> to vector<1x1x256xf32>
    %cst_39 = arith.constant dense<0.000000e+00> : vector<1xf32>
    %96 = vector.multi_reduction <add>, %95, %cst_39 [1, 2] : vector<1x1x256xf32> to vector<1xf32>
    %97 = vector.shape_cast %96 : vector<1xf32> to vector<1x1x1xf32>
    %98 = vector.extract %97[0, 0, 0] : f32 from vector<1x1x1xf32>
    %cst_40 = arith.constant 1.000000e+00 : f32
    %cst_41 = arith.constant 0.000000e+00 : f32
    %99 = vector.broadcast %cst_40 : f32 to vector<1x256xf32>
    %100 = vector.broadcast %cst_41 : f32 to vector<1x256xf32>
    %101 = arith.select %52, %99, %100 : vector<1x256xi1>, vector<1x256xf32>
    %c0_42 = arith.constant 0 : index
    %c0_43 = arith.constant 0 : index
    %102 = vector.load %arg7[%c0_42, %c0_43] : memref<1x256xf32, #tpu.memory_space<vmem>>, vector<1x256xf32>
    tpu.vector_store %arg7[%c0_42, %c0_43], %101 {strides = array<i32>} : memref<1x256xf32, #tpu.memory_space<vmem>>, vector<1x256xf32>,
    %103 = tpu.iota {dimensions = array<i32: 0>} : vector<8x128xi32>
    %c0_i32 = arith.constant 0 : i32
    %104 = vector.broadcast %c0_i32 : i32 to vector<8x128xi32>
    %105 = arith.cmpi eq, %103, %104 : vector<8x128xi32>
    %c1_i32 = arith.constant 1 : i32
    %106 = vector.broadcast %c1_i32 : i32 to vector<8x128xi32>
    %107 = arith.cmpi eq, %103, %106 : vector<8x128xi32>
    %c2_i32 = arith.constant 2 : i32
    %108 = vector.broadcast %c2_i32 : i32 to vector<8x128xi32>
    %109 = arith.cmpi eq, %103, %108 : vector<8x128xi32>
    %c3_i32 = arith.constant 3 : i32
    %110 = vector.broadcast %c3_i32 : i32 to vector<8x128xi32>
    %111 = arith.cmpi eq, %103, %110 : vector<8x128xi32>
    %cst_44 = arith.constant 0.000000e+00 : f32
    %112 = vector.broadcast %98 : f32 to vector<8x128xf32>
    %113 = vector.broadcast %cst_44 : f32 to vector<8x128xf32>
    %114 = arith.select %111, %112, %113 : vector<8x128xi1>, vector<8x128xf32>
    %115 = vector.broadcast %94 : f32 to vector<8x128xf32>
    %116 = arith.select %109, %115, %114 : vector<8x128xi1>, vector<8x128xf32>
    %117 = vector.broadcast %90 : f32 to vector<8x128xf32>
    %118 = arith.select %107, %117, %116 : vector<8x128xi1>, vector<8x128xf32>
    %119 = vector.broadcast %86 : f32 to vector<8x128xf32>
    %120 = arith.select %105, %119, %118 : vector<8x128xi1>, vector<8x128xf32>
    %c0_45 = arith.constant 0 : index
    %c0_46 = arith.constant 0 : index
    %121 = vector.load %arg6[%c0_45, %c0_46] : memref<8x128xf32, #tpu.memory_space<vmem>>, vector<8x128xf32>
    tpu.vector_store %arg6[%c0_45, %c0_46], %120 {strides = array<i32>} : memref<8x128xf32, #tpu.memory_space<vmem>>, vector<8x128xf32>,
    return
  }
  func.func @transform_0(%arg0: i32) -> (i32, i32) {
    %c0_i32 = arith.constant 0 : i32
    %c0_i32_0 = arith.constant 0 : i32
    return %c0_i32, %arg0 : i32, i32
  }
  func.func @transform_1(%arg0: i32) -> (i32, i32) {
    %c0_i32 = arith.constant 0 : i32
    %c0_i32_0 = arith.constant 0 : i32
    return %c0_i32, %arg0 : i32, i32
  }
  func.func @transform_2(%arg0: i32) -> (i32, i32) {
    %c0_i32 = arith.constant 0 : i32
    %c0_i32_0 = arith.constant 0 : i32
    return %c0_i32, %arg0 : i32, i32
  }
  func.func @transform_3(%arg0: i32) -> (i32, i32) {
    %c0_i32 = arith.constant 0 : i32
    %c0_i32_0 = arith.constant 0 : i32
    return %c0_i32, %arg0 : i32, i32
  }
  func.func @transform_4(%arg0: i32) -> (i32, i32) {
    %c0_i32 = arith.constant 0 : i32
    %c0_i32_0 = arith.constant 0 : i32
    return %c0_i32, %arg0 : i32, i32
  }
  func.func @transform_5(%arg0: i32) -> (i32, i32) {
    %c0_i32 = arith.constant 0 : i32
    %c0_i32_0 = arith.constant 0 : i32
    return %arg0, %c0_i32 : i32, i32
  }
  func.func @transform_6(%arg0: i32) -> (i32, i32) {
    %c0_i32 = arith.constant 0 : i32
    %c0_i32_0 = arith.constant 0 : i32
    return %c0_i32, %arg0 : i32, i32
  }
}

</mosaic_0001>

<bundles_post_ra>
// kernel: loss_forward.1
= control target key start
LH: loop header
LB: loop body
LE: loop exit
PB: predicated region body
PF: predicated region fallthrough
CT: control target
= control target key end

     0   :  { %s5704_s0 = inlined_call_operand.vmem [shape: f32[12,300], index: 0, kind: input, shape index: {}]   ;;  %s5705_s1 = inlined_call_operand.vmem [shape: f32[12,300], index: 1, kind: input, shape index: {}]   ;;  %s5706_s2 = inlined_call_operand.vmem [shape: f32[3,300], index: 2, kind: input, shape index: {}]   ;;  %s5707_s3 = inlined_call_operand.vmem [shape: f32[8,300], index: 3, kind: input, shape index: {}]   ;;  %s5708_s4 = inlined_call_operand.vmem [shape: f32[24,300], index: 4, kind: input, shape index: {}]   ;;  %s5709_s5 = inlined_call_operand.vmem [shape: f32[16,128], index: 5, kind: output, shape index: {0}]   ;;  %s5710_s6 = inlined_call_operand.vmem [shape: f32[1,300], index: 6, kind: output, shape index: {1}]  }
   0x1   :  { %5713 = sst [smem:[#allocation8_spill]] %s5704_s0 }
   0x2   :  { %s4192_s21 = smov 0   ;;  %s4194_s22 = smov 0  }
   0x3   :  { %s4196_s23 = smov 0  }
   0x4 LB: > { %s4208_s24 = sadd.s32 4294967295, %s3889_s23   ;;  %s4211_s25 = sadd.s32 1, %s3889_s23   ;;  %s3889_s23 = sphi %s4196_s23, %s5763_s23   ;;  %s3885_s22 = sphi %s4194_s22, %s5766_s22   ;;  %s3881_s21 = sphi %s4192_s21, %s5765_s21  }
   0x5   : > { %5714 = sst [smem:[#allocation6_spill]] %s4211_s25  ;;  %s21_s26 = ssub.s32 %s3889_s23, %s4211_s25 }
   0x6   : > { %s24_s27 = sadd.s32 1, %s3885_s22  ;;  %p22_p0 = scmp.eq.s32.totalorder %s21_s26, 0 }
   0x7   : > { %p31_p1 = scmp.ne.s32.totalorder %s3885_s22, %s3881_s21  ;;  %p32_p2 = scmp.eq.s32.totalorder %s3889_s23, 0 }
   0x8   : > { %p191_p3 = scmp.eq.s32.totalorder %s4208_s24, 1  ;;  %p2907_p6 = scmp.ge.s32.totalorder %s3889_s23, 2 }
   0x9   : > { %s4221_s28 = scalar_select %p22_p0, %s3885_s22, %s24_s27  }
   0xa   : > { %p4223_p4 = por %p32_p2, %p31_p1  ;;  %p4227_p5 = por %p191_p3, %p31_p1 }
   0xb   : > { %5715 = sst [smem:[#allocation7_spill]] %s4221_s28  ;;  %213 = sbr.rel (%p2907_p6) target bundleno = 478 (0x1de), region = 16 }
  0x12   : > { %216 = sbr.rel (!%p4223_p4) target bundleno = 162 (0xa2), region = 20  ;;  %s218_s7 = sand.u32 (%p4223_p4), 1, %s3885_s22  }
  0x13   : > { %s2909_s8 = sshll.u32 (%p4223_p4), %s3889_s23, 1  ;;  %s2908_s9 = sshll.u32 (%p4223_p4), %s218_s7, 5 }
  0x14   : > { %s222_s10 = ssub.s32 (%p4223_p4), 3, %s2909_s8  ;;  %s3022_s11 = sshll.u32 (%p4223_p4), %s3889_s23, 4 }
  0x15   : > { %p223_p7 = scmp.lt.s32.totalorder (%p4223_p4), %s222_s10, 2  ;;  %s5718_s0 = sld [smem:[#allocation8_spill]] (%p4223_p4) }
  0x16   : > { %s4244_s17 = scalar_lea.vmem (%p4223_p4), [#allocation2], %s2908_s9  }
  0x19   : > { %s5768_s10 = smov (!%p223_p7, %s222_s10), 2 }
  0x1a   : > { %s2910_s15 = sshll.u32 %s5768_s10, 8  ;;  %s4242_s16 = sshll.u32 %s5768_s10, 3 }
  0x1b   : > { %s4240_s14 = scalar_lea.vmem %s5718_s0, %s3022_s11   ;;  %p2914_p8 = scmp.eq.s32.totalorder %s2910_s15, 0 }
  0x1c   : > { %p233_p9 = scmp.lt.u32.totalorder (!%p2914_p8), %s4242_s16, 8 }
  0x1d   : > { %232 = sbr.rel (%p2914_p8) target bundleno = 162 (0xa2), region = 24 }
  0x24   : > { %236 = sbr.rel (%p233_p9) target bundleno = 153 (0x99), region = 28  ;;  %s4248_s18 = sand.u32 (!%p233_p9), 7, %s4242_s16  }
  0x25   : > { %p254_p10 = scmp.eq.s32.totalorder (!%p233_p9), %s4248_s18, 0  ;;  %p2915_p11 = scmp.ne.s32.totalorder (!%p233_p9), %s4248_s18, 0 }
  0x2b   : > { %257 = sbr.rel (%p2915_p11) target bundleno = 96 (0x60), region = 43  ;;  %s258_s19 = sshrl.u32 (!%p2915_p11), %s4242_s16, 3 }
  0x2c   : > { %s4255_s20 = sshrl.u32 (!%p2915_p11), %s258_s19, 5 }
  0x2d   : > { %p2916_p12 = scmp.le.s32.totalorder (!%p2915_p11), %s4255_s20, 0 }
  0x32   : > { %2632 = sbr.rel (%p2916_p12) target bundleno = 76 (0x4c), region = 441  ;;  %s5719_s26 = smov (!%p2916_p12), %s4244_s17 }
  0x33   : > { %s5720_s27 = smov (!%p2916_p12), %s4240_s14  ;;  %s4264_s7 = smov (!%p2916_p12), 0  }
  0x34   : > { %s4266_s8 = smov (!%p2916_p12), 0  }
  0x39 LB: >> { %v277_v0 = vld [vmem:[%s3897_s27 + $0x18] sm:$0xff]  ;;  %v279_v1 = vld [vmem:[%s3897_s27 + $0x20] sm:$0xff]  ;;  %v281_v2 = vld [vmem:[%s3897_s27 + $0x28] sm:$0xff]  ;;  %s399_s9 = sadd.s32 1, %s3901_s7  ;;  %s265_s8 = sadd.s32 1, %s3905_s8   ;;  %s3905_s8 = sphi %s4266_s8, %s265_s8   ;;  %s3901_s7 = sphi %s4264_s7, %s5723_s7   ;;  %s3897_s27 = sphi %s5720_s27, %s5722_s27   ;;  %s3893_s26 = sphi %s5719_s26, %s5721_s26  }
  0x3a   : >> { %v283_v3 = vld [vmem:[%s3897_s27 + $0x30] sm:$0xff]  ;;  %v285_v4 = vld [vmem:[%s3897_s27 + $0x38] sm:$0xff]  ;;  %v287_v5 = vld [vmem:[%s3897_s27 + $0x40] sm:$0xff]  ;;  %336 = vst [vmem:[%s3893_s26 + $0x10] sm:$0xff] %v277_v0  ;;  %p400_p13 = scmp.ge.s32.totalorder %s399_s9, %s4255_s20  ;;  %p264_p0 = scmp.ge.s32.totalorder %s265_s8, %s4255_s20 }
  0x3b   : >> { %338 = vst [vmem:[%s3893_s26 + $0x18] sm:$0xff] %v279_v1  ;;  %340 = vst [vmem:[%s3893_s26 + $0x20] sm:$0xff] %v281_v2  ;;  %v289_v6 = vld [vmem:[%s3897_s27 + $0x48] sm:$0xff]  ;;  %v291_v7 = vld [vmem:[%s3897_s27 + $0x50] sm:$0xff] }
  0x3c   : >> { %v293_v8 = vld [vmem:[%s3897_s27 + $0x58] sm:$0xff]  ;;  %342 = vst [vmem:[%s3893_s26 + $0x28] sm:$0xff] %v283_v3  ;;  %344 = vst [vmem:[%s3893_s26 + $0x30] sm:$0xff] %v285_v4  ;;  %v295_v9 = vld [vmem:[%s3897_s27 + $0x60] sm:$0xff]  ;;  %s5770_s9 = smov (%p400_p13, %s399_s9), 0 }
  0x3d   : >> { %346 = vst [vmem:[%s3893_s26 + $0x38] sm:$0xff] %v287_v5  ;;  %v297_v10 = vld [vmem:[%s3897_s27 + $0x68] sm:$0xff]  ;;  %v299_v11 = vld [vmem:[%s3897_s27 + $0x70] sm:$0xff]  ;;  %348 = vst [vmem:[%s3893_s26 + $0x40] sm:$0xff] %v289_v6  ;;  %s2917_s10 = sshll.u32 %s5770_s9, 8  ;;  %s5723_s7 = smov %s5770_s9 }
  0x3e   : >> { %350 = vst [vmem:[%s3893_s26 + $0x48] sm:$0xff] %v291_v7  ;;  %352 = vst [vmem:[%s3893_s26 + $0x50] sm:$0xff] %v293_v8  ;;  %v301_v12 = vld [vmem:[%s3897_s27 + $0x78] sm:$0xff]  ;;  %v303_v13 = vld [vmem:[%s3897_s27 + $0x80] sm:$0xff]  ;;  %s404_s11 = scalar_lea.vmem %s4240_s14, %s2917_s10   ;;  %s405_s12 = scalar_lea.vmem %s4244_s17, %s2917_s10 [#allocation2]  }
  0x3f   : >> { %v305_v14 = vld [vmem:[%s3897_s27 + $0x88] sm:$0xff]  ;;  %354 = vst [vmem:[%s3893_s26 + $0x58] sm:$0xff] %v295_v9  ;;  %356 = vst [vmem:[%s3893_s26 + $0x60] sm:$0xff] %v297_v10  ;;  %v307_v15 = vld [vmem:[%s3897_s27 + $0x90] sm:$0xff] }
  0x40   : >> { %358 = vst [vmem:[%s3893_s26 + $0x68] sm:$0xff] %v299_v11  ;;  %v309_v16 = vld [vmem:[%s3897_s27 + $0x98] sm:$0xff]  ;;  %v311_v17 = vld [vmem:[%s3897_s27 + $0xa0] sm:$0xff]  ;;  %360 = vst [vmem:[%s3893_s26 + $0x70] sm:$0xff] %v301_v12 }
  0x41   : >> { %362 = vst [vmem:[%s3893_s26 + $0x78] sm:$0xff] %v303_v13  ;;  %364 = vst [vmem:[%s3893_s26 + $0x80] sm:$0xff] %v305_v14  ;;  %v313_v18 = vld [vmem:[%s3897_s27 + $0xa8] sm:$0xff]  ;;  %v315_v19 = vld [vmem:[%s3897_s27 + $0xb0] sm:$0xff] }
  0x42   : >> { %v317_v20 = vld [vmem:[%s3897_s27 + $0xb8] sm:$0xff]  ;;  %366 = vst [vmem:[%s3893_s26 + $0x88] sm:$0xff] %v307_v15  ;;  %368 = vst [vmem:[%s3893_s26 + $0x90] sm:$0xff] %v309_v16  ;;  %v319_v21 = vld [vmem:[%s3897_s27 + $0xc0] sm:$0xff] }
  0x43   : >> { %370 = vst [vmem:[%s3893_s26 + $0x98] sm:$0xff] %v311_v17  ;;  %v321_v22 = vld [vmem:[%s3897_s27 + $0xc8] sm:$0xff]  ;;  %v323_v23 = vld [vmem:[%s3897_s27 + $0xd0] sm:$0xff]  ;;  %372 = vst [vmem:[%s3893_s26 + $0xa0] sm:$0xff] %v313_v18 }
  0x44   : >> { %374 = vst [vmem:[%s3893_s26 + $0xa8] sm:$0xff] %v315_v19  ;;  %376 = vst [vmem:[%s3893_s26 + $0xb0] sm:$0xff] %v317_v20  ;;  %v325_v24 = vld [vmem:[%s3897_s27 + $0xd8] sm:$0xff]  ;;  %v327_v25 = vld [vmem:[%s3897_s27 + $0xe0] sm:$0xff] }
  0x45   : >> { %v329_v26 = vld [vmem:[%s3897_s27 + $0xe8] sm:$0xff]  ;;  %378 = vst [vmem:[%s3893_s26 + $0xb8] sm:$0xff] %v319_v21  ;;  %380 = vst [vmem:[%s3893_s26 + $0xc0] sm:$0xff] %v321_v22  ;;  %v331_v27 = vld [vmem:[%s3897_s27 + $0xf0] sm:$0xff]  ;;  %267 = sbr.rel (!%p264_p0) target bundleno = 57 (0x39), region = 447 }
  0x46   : >> { %382 = vst [vmem:[%s3893_s26 + $0xc8] sm:$0xff] %v323_v23  ;;  %v333_v28 = vld [vmem:[%s3897_s27 + $0xf8] sm:$0xff]  ;;  %v271_v29 = vld [vmem:[%s3897_s27] sm:$0xff]  ;;  %384 = vst [vmem:[%s3893_s26 + $0xd0] sm:$0xff] %v325_v24 }
  0x47   : >> { %386 = vst [vmem:[%s3893_s26 + $0xd8] sm:$0xff] %v327_v25  ;;  %388 = vst [vmem:[%s3893_s26 + $0xe0] sm:$0xff] %v329_v26  ;;  %v273_v30 = vld [vmem:[%s3897_s27 + $0x8] sm:$0xff]  ;;  %v393_v31 = vld [vmem:[%s3897_s27 + $0x100] sm:$0xff] }
  0x48   : >> { %272 = vst [vmem:[%s3893_s26] sm:$0xff] %v271_v29  ;;  %390 = vst [vmem:[%s3893_s26 + $0xe8] sm:$0xff] %v331_v27  ;;  %v395_v32 = vld [vmem:[%s3897_s27 + $0x108] sm:$0xff]  ;;  %v397_v33 = vld [vmem:[%s3897_s27 + $0x110] sm:$0xff]  ;;  %s5722_s27 = smov %s404_s11 }
  0x49   : >> { %392 = vst [vmem:[%s3893_s26 + $0xf0] sm:$0xff] %v333_v28  ;;  %274 = vst [vmem:[%s3893_s26 + $0x8] sm:$0xff] %v273_v30 }
  0x4a   : >> { %394 = vst [vmem:[%s3893_s26 + $0xf8] sm:$0xff] %v393_v31  ;;  %396 = vst [vmem:[%s3893_s26 + $0x100] sm:$0xff] %v395_v32 }
  0x4b   : >> { %398 = vst [vmem:[%s3893_s26 + $0x108] sm:$0xff] %v397_v33  ;;  %s5721_s26 = smov %s405_s12 }
  0x4c PF: > { %s4368_s13 = sand.u32 31, %s258_s19   ;;  %s3023_s15 = sshll.u32 %s4255_s20, 12 }
  0x4d   : > { %s410_s10 = sshra.s32 %s3023_s15, 4  ;;  %p2922_p1 = scmp.le.s32.totalorder %s4368_s13, 0 }
  0x4e   : > { %s4372_s0 = scalar_lea.vmem %s4240_s14, %s410_s10   ;;  %s414_s12 = scalar_lea.vmem %s4244_s17, %s410_s10 [#allocation2]  }
  0x4f   : > { %2646 = sbr.rel (%p2922_p1) target bundleno = 96 (0x60), region = 452  ;;  %s3907_s9 = smov (!%p2922_p1), %s414_s12  }
  0x50   : > { %s3911_s8 = smov (!%p2922_p1), %s4372_s0   ;;  %s3915_s11 = smov (!%p2922_p1), 0  }
  0x51   : > { %s3919_s26 = smov (!%p2922_p1), 0  }
  0x56 LB: >> { %v426_v34 = vld [vmem:[%s3913_s8] sm:$0xff]  ;;  %v428_v35 = vld [vmem:[%s3913_s8 + $0x18] sm:$0xff]  ;;  %s430_s19 = sadd.s32 1, %s3917_s11  ;;  %s420_s26 = sadd.s32 1, %s3921_s26   ;;  %s3921_s26 = sphi %s3919_s26, %s420_s26   ;;  %s3917_s11 = sphi %s3915_s11, %s3916_s11   ;;  %s3913_s8 = sphi %s3911_s8, %s435_s8   ;;  %s3909_s9 = sphi %s3907_s9, %s436_s9  }
  0x57   : >> { %427 = vst [vmem:[%s3909_s9] sm:$0xff] %v426_v34  ;;  %429 = vst [vmem:[%s3909_s9 + $0x10] sm:$0xff] %v428_v35  ;;  %p431_p2 = scmp.ge.s32.totalorder %s430_s19, %s4368_s13  ;;  %p419_p3 = scmp.ge.s32.totalorder %s420_s26, %s4368_s13 }
  0x59   : >> { %s5772_s19 = smov (%p431_p2, %s430_s19), 0  ;;  %422 = sbr.rel (!%p419_p3) target bundleno = 86 (0x56), region = 458 }
  0x5a   : >> { %s2923_s20 = sshll.u32 %s5772_s19, 3  ;;  %s3916_s11 = smov %s5772_s19  }
  0x5b   : >> { %s435_s8 = scalar_lea.vmem %s4372_s0, %s2923_s20   ;;  %s436_s9 = scalar_lea.vmem %s414_s12, %s2923_s20 [#allocation2]  }
  0x60 PF: > { %439 = sbr.rel (%p254_p10) target bundleno = 153 (0x99), region = 61  ;;  %s441_s27 = ssub.s32 (!%p254_p10), %s4242_s16, %s4248_s18 }
  0x61   : > { %s445_s7 = sshrl.u32 (!%p254_p10), %s4242_s16, 3  ;;  %s4386_s15 = scalar_lea.vmem (!%p254_p10), %s4240_s14, %s441_s27 }
  0x62   : > { %s4389_s10 = scalar_lea.vmem (!%p254_p10), %s4244_s17, %s441_s27 [#allocation2]  ;;  %s4393_s9 = sshrl.u32 (!%p254_p10), %s445_s7, 5 }
  0x63   : > { %p2925_p6 = scmp.le.s32.totalorder (!%p254_p10), %s4393_s9, 0 }
  0x67   : > { %2660 = sbr.rel (%p2925_p6) target bundleno = 129 (0x81), region = 463  ;;  %s5724_s0 = smov (!%p2925_p6), %s4244_s17 }
  0x68   : > { %s5725_s13 = smov (!%p2925_p6), %s4240_s14  ;;  %s4402_s12 = smov (!%p2925_p6), 0  }
  0x69   : > { %s4404_s8 = smov (!%p2925_p6), 0  }
  0x6e LB: >> { %v464_v36 = vld [vmem:[%s3929_s13 + $0x18] sm:$0xff]  ;;  %v466_v37 = vld [vmem:[%s3929_s13 + $0x20] sm:$0xff]  ;;  %v468_v38 = vld [vmem:[%s3929_s13 + $0x28] sm:$0xff]  ;;  %s586_s11 = sadd.s32 1, %s3933_s12  ;;  %s452_s8 = sadd.s32 1, %s3937_s8   ;;  %s3937_s8 = sphi %s4404_s8, %s452_s8   ;;  %s3933_s12 = sphi %s4402_s12, %s5728_s12   ;;  %s3929_s13 = sphi %s5725_s13, %s5727_s13   ;;  %s3925_s0 = sphi %s5724_s0, %s5726_s0  }
  0x6f   : >> { %v470_v39 = vld [vmem:[%s3929_s13 + $0x30] sm:$0xff]  ;;  %v472_v40 = vld [vmem:[%s3929_s13 + $0x38] sm:$0xff]  ;;  %v474_v41 = vld [vmem:[%s3929_s13 + $0x40] sm:$0xff]  ;;  %523 = vst [vmem:[%s3925_s0 + $0x10] sm:$0xff] %v464_v36  ;;  %p587_p7 = scmp.ge.s32.totalorder %s586_s11, %s4393_s9  ;;  %p451_p8 = scmp.ge.s32.totalorder %s452_s8, %s4393_s9 }
  0x70   : >> { %525 = vst [vmem:[%s3925_s0 + $0x18] sm:$0xff] %v466_v37  ;;  %527 = vst [vmem:[%s3925_s0 + $0x20] sm:$0xff] %v468_v38  ;;  %v476_v42 = vld [vmem:[%s3929_s13 + $0x48] sm:$0xff]  ;;  %v478_v43 = vld [vmem:[%s3929_s13 + $0x50] sm:$0xff] }
  0x71   : >> { %v480_v44 = vld [vmem:[%s3929_s13 + $0x58] sm:$0xff]  ;;  %529 = vst [vmem:[%s3925_s0 + $0x28] sm:$0xff] %v470_v39  ;;  %531 = vst [vmem:[%s3925_s0 + $0x30] sm:$0xff] %v472_v40  ;;  %v482_v45 = vld [vmem:[%s3929_s13 + $0x60] sm:$0xff]  ;;  %s5774_s11 = smov (%p587_p7, %s586_s11), 0 }
  0x72   : >> { %533 = vst [vmem:[%s3925_s0 + $0x38] sm:$0xff] %v474_v41  ;;  %v484_v46 = vld [vmem:[%s3929_s13 + $0x68] sm:$0xff]  ;;  %v486_v47 = vld [vmem:[%s3929_s13 + $0x70] sm:$0xff]  ;;  %535 = vst [vmem:[%s3925_s0 + $0x40] sm:$0xff] %v476_v42  ;;  %s2926_s26 = sshll.u32 %s5774_s11, 8  ;;  %s5728_s12 = smov %s5774_s11 }
  0x73   : >> { %537 = vst [vmem:[%s3925_s0 + $0x48] sm:$0xff] %v478_v43  ;;  %539 = vst [vmem:[%s3925_s0 + $0x50] sm:$0xff] %v480_v44  ;;  %v488_v48 = vld [vmem:[%s3929_s13 + $0x78] sm:$0xff]  ;;  %v490_v49 = vld [vmem:[%s3929_s13 + $0x80] sm:$0xff]  ;;  %s591_s19 = scalar_lea.vmem %s4240_s14, %s2926_s26   ;;  %s592_s20 = scalar_lea.vmem %s4244_s17, %s2926_s26 [#allocation2]  }
  0x74   : >> { %v492_v50 = vld [vmem:[%s3929_s13 + $0x88] sm:$0xff]  ;;  %541 = vst [vmem:[%s3925_s0 + $0x58] sm:$0xff] %v482_v45  ;;  %543 = vst [vmem:[%s3925_s0 + $0x60] sm:$0xff] %v484_v46  ;;  %v494_v51 = vld [vmem:[%s3929_s13 + $0x90] sm:$0xff] }
  0x75   : >> { %545 = vst [vmem:[%s3925_s0 + $0x68] sm:$0xff] %v486_v47  ;;  %v496_v52 = vld [vmem:[%s3929_s13 + $0x98] sm:$0xff]  ;;  %v498_v53 = vld [vmem:[%s3929_s13 + $0xa0] sm:$0xff]  ;;  %547 = vst [vmem:[%s3925_s0 + $0x70] sm:$0xff] %v488_v48 }
  0x76   : >> { %549 = vst [vmem:[%s3925_s0 + $0x78] sm:$0xff] %v490_v49  ;;  %551 = vst [vmem:[%s3925_s0 + $0x80] sm:$0xff] %v492_v50  ;;  %v500_v54 = vld [vmem:[%s3929_s13 + $0xa8] sm:$0xff]  ;;  %v502_v55 = vld [vmem:[%s3929_s13 + $0xb0] sm:$0xff] }
  0x77   : >> { %v504_v56 = vld [vmem:[%s3929_s13 + $0xb8] sm:$0xff]  ;;  %553 = vst [vmem:[%s3925_s0 + $0x88] sm:$0xff] %v494_v51  ;;  %555 = vst [vmem:[%s3925_s0 + $0x90] sm:$0xff] %v496_v52  ;;  %v506_v57 = vld [vmem:[%s3929_s13 + $0xc0] sm:$0xff] }
  0x78   : >> { %557 = vst [vmem:[%s3925_s0 + $0x98] sm:$0xff] %v498_v53  ;;  %v508_v58 = vld [vmem:[%s3929_s13 + $0xc8] sm:$0xff]  ;;  %v510_v59 = vld [vmem:[%s3929_s13 + $0xd0] sm:$0xff]  ;;  %559 = vst [vmem:[%s3925_s0 + $0xa0] sm:$0xff] %v500_v54 }
  0x79   : >> { %561 = vst [vmem:[%s3925_s0 + $0xa8] sm:$0xff] %v502_v55  ;;  %563 = vst [vmem:[%s3925_s0 + $0xb0] sm:$0xff] %v504_v56  ;;  %v512_v60 = vld [vmem:[%s3929_s13 + $0xd8] sm:$0xff]  ;;  %v514_v61 = vld [vmem:[%s3929_s13 + $0xe0] sm:$0xff] }
  0x7a   : >> { %v516_v62 = vld [vmem:[%s3929_s13 + $0xe8] sm:$0xff]  ;;  %565 = vst [vmem:[%s3925_s0 + $0xb8] sm:$0xff] %v506_v57  ;;  %567 = vst [vmem:[%s3925_s0 + $0xc0] sm:$0xff] %v508_v58  ;;  %v518_v63 = vld [vmem:[%s3929_s13 + $0xf0] sm:$0xff]  ;;  %454 = sbr.rel (!%p451_p8) target bundleno = 110 (0x6e), region = 469 }
  0x7b   : >> { %569 = vst [vmem:[%s3925_s0 + $0xc8] sm:$0xff] %v510_v59  ;;  %v520_v0 = vld [vmem:[%s3929_s13 + $0xf8] sm:$0xff]  ;;  %v458_v1 = vld [vmem:[%s3929_s13] sm:$0xff]  ;;  %571 = vst [vmem:[%s3925_s0 + $0xd0] sm:$0xff] %v512_v60 }
  0x7c   : >> { %573 = vst [vmem:[%s3925_s0 + $0xd8] sm:$0xff] %v514_v61  ;;  %575 = vst [vmem:[%s3925_s0 + $0xe0] sm:$0xff] %v516_v62  ;;  %v460_v2 = vld [vmem:[%s3929_s13 + $0x8] sm:$0xff]  ;;  %v580_v3 = vld [vmem:[%s3929_s13 + $0x100] sm:$0xff] }
  0x7d   : >> { %459 = vst [vmem:[%s3925_s0] sm:$0xff] %v458_v1  ;;  %577 = vst [vmem:[%s3925_s0 + $0xe8] sm:$0xff] %v518_v63  ;;  %v582_v4 = vld [vmem:[%s3929_s13 + $0x108] sm:$0xff]  ;;  %v584_v5 = vld [vmem:[%s3929_s13 + $0x110] sm:$0xff]  ;;  %s5727_s13 = smov %s591_s19 }
  0x7e   : >> { %579 = vst [vmem:[%s3925_s0 + $0xf0] sm:$0xff] %v520_v0  ;;  %461 = vst [vmem:[%s3925_s0 + $0x8] sm:$0xff] %v460_v2 }
  0x7f   : >> { %581 = vst [vmem:[%s3925_s0 + $0xf8] sm:$0xff] %v580_v3  ;;  %583 = vst [vmem:[%s3925_s0 + $0x100] sm:$0xff] %v582_v4 }
  0x80   : >> { %585 = vst [vmem:[%s3925_s0 + $0x108] sm:$0xff] %v584_v5  ;;  %s5726_s0 = smov %s592_s20 }
  0x81 PF: > { %s4506_s27 = sand.u32 31, %s445_s7   ;;  %s3025_s26 = sshll.u32 %s4393_s9, 12 }
  0x82   : > { %s597_s28 = sshra.s32 %s3025_s26, 4  ;;  %p2931_p9 = scmp.le.s32.totalorder %s4506_s27, 0 }
  0x83   : > { %s4510_s25 = scalar_lea.vmem %s4240_s14, %s597_s28   ;;  %s601_s20 = scalar_lea.vmem %s4244_s17, %s597_s28 [#allocation2]  }
  0x84   : > { %2674 = sbr.rel (%p2931_p9) target bundleno = 149 (0x95), region = 474  ;;  %s3939_s11 = smov (!%p2931_p9), %s601_s20  }
  0x85   : > { %s3943_s8 = smov (!%p2931_p9), %s4510_s25   ;;  %s3947_s19 = smov (!%p2931_p9), 0  }
  0x86   : > { %s3951_s0 = smov (!%p2931_p9), 0  }
  0x8b LB: >> { %v613_v6 = vld [vmem:[%s3945_s8] sm:$0xff]  ;;  %v615_v7 = vld [vmem:[%s3945_s8 + $0x18] sm:$0xff]  ;;  %s617_s7 = sadd.s32 1, %s3949_s19  ;;  %s607_s0 = sadd.s32 1, %s3953_s0   ;;  %s3953_s0 = sphi %s3951_s0, %s607_s0   ;;  %s3949_s19 = sphi %s3947_s19, %s3948_s19   ;;  %s3945_s8 = sphi %s3943_s8, %s622_s8   ;;  %s3941_s11 = sphi %s3939_s11, %s623_s11  }
  0x8c   : >> { %614 = vst [vmem:[%s3941_s11] sm:$0xff] %v613_v6  ;;  %616 = vst [vmem:[%s3941_s11 + $0x10] sm:$0xff] %v615_v7  ;;  %p618_p10 = scmp.ge.s32.totalorder %s617_s7, %s4506_s27  ;;  %p606_p11 = scmp.ge.s32.totalorder %s607_s0, %s4506_s27 }
  0x8e   : >> { %s5776_s7 = smov (%p618_p10, %s617_s7), 0  ;;  %609 = sbr.rel (!%p606_p11) target bundleno = 139 (0x8b), region = 480 }
  0x8f   : >> { %s2932_s28 = sshll.u32 %s5776_s7, 3  ;;  %s3948_s19 = smov %s5776_s7  }
  0x90   : >> { %s622_s8 = scalar_lea.vmem %s4510_s25, %s2932_s28   ;;  %s623_s11 = scalar_lea.vmem %s601_s20, %s2932_s28 [#allocation2]  }
  0x95 PF: > { %s4147_s9 = smov 0  }
  0x96   : > { %s624_s13 = sshllo.u32 %s4147_s9, %s4248_s18 }
  0x97   : > { %v633_v8 = vld [vmem:[%s4386_s15] sm:%s624_s13]  ;;  %v635_v9 = vld [vmem:[%s4386_s15 + $0x18] sm:%s624_s13] }
  0x98   : > { %634 = vst [vmem:[%s4389_s10] sm:%s624_s13] %v633_v8  ;;  %636 = vst [vmem:[%s4389_s10 + $0x10] sm:%s624_s13] %v635_v9 }
  0x99 PF: > { %p2934_p12 = scmp.ge.u32.totalorder %s4242_s16, 8 }
  0x9a   : > { %s4148_s12 = smov (!%p2934_p12), 0  }
  0x9b   : > { %239 = sbr.rel (%p2934_p12) target bundleno = 162 (0xa2), region = 32  ;;  %s240_s25 = sshllo.u32 (!%p2934_p12), %s4148_s12, %s4242_s16 }
  0x9c   : > { %v249_v10 = vld [vmem:[%s4240_s14] sm:%s240_s25] (!%p2934_p12)  ;;  %v251_v11 = vld [vmem:[%s4240_s14 + $0x18] sm:%s240_s25] (!%p2934_p12) }
  0x9d   : > { %250 = vst [vmem:[%s4244_s17] sm:%s240_s25] (!%p2934_p12), %v249_v10  ;;  %252 = vst [vmem:[%s4244_s17 + $0x10] sm:%s240_s25] (!%p2934_p12), %v251_v11 }
  0xa2 PF: > { %640 = sbr.rel (!%p4223_p4) target bundleno = 306 (0x132), region = 86  ;;  %s642_s18 = sand.u32 (%p4223_p4), 1, %s3885_s22  }
  0xa3   : > { %s2936_s15 = sshll.u32 (%p4223_p4), %s3889_s23, 1  ;;  %s2935_s10 = sshll.u32 (%p4223_p4), %s642_s18, 5 }
  0xa4   : > { %s646_s27 = ssub.s32 (%p4223_p4), 3, %s2936_s15  ;;  %s3027_s26 = sshll.u32 (%p4223_p4), %s3889_s23, 4 }
  0xa5   : > { %p647_p13 = scmp.lt.s32.totalorder (%p4223_p4), %s646_s27, 2  ;;  %s4537_s17 = scalar_lea.vmem (%p4223_p4), %s5705_s1, %s3027_s26  }
  0xa6   : > { %s4541_s8 = scalar_lea.vmem (%p4223_p4), [#allocation3], %s2935_s10  }
  0xa9   : > { %s5778_s27 = smov (!%p647_p13, %s646_s27), 2 }
  0xaa   : > { %s2937_s20 = sshll.u32 %s5778_s27, 8  ;;  %s4539_s11 = sshll.u32 %s5778_s27, 3 }
  0xab   : > { %p2941_p0 = scmp.eq.s32.totalorder %s2937_s20, 0 }
  0xac   : > { %p657_p1 = scmp.lt.u32.totalorder (!%p2941_p0), %s4539_s11, 8 }
  0xad   : > { %656 = sbr.rel (%p2941_p0) target bundleno = 306 (0x132), region = 90 }
  0xb4   : > { %660 = sbr.rel (%p657_p1) target bundleno = 297 (0x129), region = 94  ;;  %s4545_s19 = sand.u32 (!%p657_p1), 7, %s4539_s11  }
  0xb5   : > { %p678_p2 = scmp.eq.s32.totalorder (!%p657_p1), %s4545_s19, 0  ;;  %p2942_p3 = scmp.ne.s32.totalorder (!%p657_p1), %s4545_s19, 0 }
  0xbb   : > { %681 = sbr.rel (%p2942_p3) target bundleno = 240 (0xf0), region = 109  ;;  %s682_s0 = sshrl.u32 (!%p2942_p3), %s4539_s11, 3 }
  0xbc   : > { %s4552_s7 = sshrl.u32 (!%p2942_p3), %s682_s0, 5 }
  0xbd   : > { %p2943_p6 = scmp.le.s32.totalorder (!%p2942_p3), %s4552_s7, 0 }
  0xc2   : > { %2688 = sbr.rel (%p2943_p6) target bundleno = 220 (0xdc), region = 485  ;;  %s5729_s28 = smov (!%p2943_p6), %s4541_s8 }
  0xc3   : > { %s5730_s9 = smov (!%p2943_p6), %s4537_s17  ;;  %s4561_s13 = smov (!%p2943_p6), 0  }
  0xc4   : > { %s4563_s12 = smov (!%p2943_p6), 0  }
  0xc9 LB: >> { %v701_v12 = vld [vmem:[%s3961_s9 + $0x18] sm:$0xff]  ;;  %v703_v13 = vld [vmem:[%s3961_s9 + $0x20] sm:$0xff]  ;;  %v705_v14 = vld [vmem:[%s3961_s9 + $0x28] sm:$0xff]  ;;  %s823_s25 = sadd.s32 1, %s3965_s13  ;;  %s689_s12 = sadd.s32 1, %s3969_s12   ;;  %s3969_s12 = sphi %s4563_s12, %s689_s12   ;;  %s3965_s13 = sphi %s4561_s13, %s5733_s13   ;;  %s3961_s9 = sphi %s5730_s9, %s5732_s9   ;;  %s3957_s28 = sphi %s5729_s28, %s5731_s28  }
  0xca   : >> { %v707_v15 = vld [vmem:[%s3961_s9 + $0x30] sm:$0xff]  ;;  %v709_v16 = vld [vmem:[%s3961_s9 + $0x38] sm:$0xff]  ;;  %v711_v17 = vld [vmem:[%s3961_s9 + $0x40] sm:$0xff]  ;;  %760 = vst [vmem:[%s3957_s28 + $0x10] sm:$0xff] %v701_v12  ;;  %p824_p7 = scmp.ge.s32.totalorder %s823_s25, %s4552_s7  ;;  %p688_p8 = scmp.ge.s32.totalorder %s689_s12, %s4552_s7 }
  0xcb   : >> { %762 = vst [vmem:[%s3957_s28 + $0x18] sm:$0xff] %v703_v13  ;;  %764 = vst [vmem:[%s3957_s28 + $0x20] sm:$0xff] %v705_v14  ;;  %v713_v18 = vld [vmem:[%s3961_s9 + $0x48] sm:$0xff]  ;;  %v715_v19 = vld [vmem:[%s3961_s9 + $0x50] sm:$0xff] }
  0xcc   : >> { %v717_v20 = vld [vmem:[%s3961_s9 + $0x58] sm:$0xff]  ;;  %766 = vst [vmem:[%s3957_s28 + $0x28] sm:$0xff] %v707_v15  ;;  %768 = vst [vmem:[%s3957_s28 + $0x30] sm:$0xff] %v709_v16  ;;  %v719_v21 = vld [vmem:[%s3961_s9 + $0x60] sm:$0xff]  ;;  %s5780_s25 = smov (%p824_p7, %s823_s25), 0 }
  0xcd   : >> { %770 = vst [vmem:[%s3957_s28 + $0x38] sm:$0xff] %v711_v17  ;;  %v721_v22 = vld [vmem:[%s3961_s9 + $0x68] sm:$0xff]  ;;  %v723_v23 = vld [vmem:[%s3961_s9 + $0x70] sm:$0xff]  ;;  %772 = vst [vmem:[%s3957_s28 + $0x40] sm:$0xff] %v713_v18  ;;  %s2944_s18 = sshll.u32 %s5780_s25, 8  ;;  %s5733_s13 = smov %s5780_s25 }
  0xce   : >> { %774 = vst [vmem:[%s3957_s28 + $0x48] sm:$0xff] %v715_v19  ;;  %776 = vst [vmem:[%s3957_s28 + $0x50] sm:$0xff] %v717_v20  ;;  %v725_v24 = vld [vmem:[%s3961_s9 + $0x78] sm:$0xff]  ;;  %v727_v25 = vld [vmem:[%s3961_s9 + $0x80] sm:$0xff]  ;;  %s828_s15 = scalar_lea.vmem %s4537_s17, %s2944_s18   ;;  %s829_s10 = scalar_lea.vmem %s4541_s8, %s2944_s18 [#allocation3]  }
  0xcf   : >> { %v729_v26 = vld [vmem:[%s3961_s9 + $0x88] sm:$0xff]  ;;  %778 = vst [vmem:[%s3957_s28 + $0x58] sm:$0xff] %v719_v21  ;;  %780 = vst [vmem:[%s3957_s28 + $0x60] sm:$0xff] %v721_v22  ;;  %v731_v27 = vld [vmem:[%s3961_s9 + $0x90] sm:$0xff] }
  0xd0   : >> { %782 = vst [vmem:[%s3957_s28 + $0x68] sm:$0xff] %v723_v23  ;;  %v733_v28 = vld [vmem:[%s3961_s9 + $0x98] sm:$0xff]  ;;  %v735_v29 = vld [vmem:[%s3961_s9 + $0xa0] sm:$0xff]  ;;  %784 = vst [vmem:[%s3957_s28 + $0x70] sm:$0xff] %v725_v24 }
  0xd1   : >> { %786 = vst [vmem:[%s3957_s28 + $0x78] sm:$0xff] %v727_v25  ;;  %788 = vst [vmem:[%s3957_s28 + $0x80] sm:$0xff] %v729_v26  ;;  %v737_v30 = vld [vmem:[%s3961_s9 + $0xa8] sm:$0xff]  ;;  %v739_v31 = vld [vmem:[%s3961_s9 + $0xb0] sm:$0xff] }
  0xd2   : >> { %v741_v32 = vld [vmem:[%s3961_s9 + $0xb8] sm:$0xff]  ;;  %790 = vst [vmem:[%s3957_s28 + $0x88] sm:$0xff] %v731_v27  ;;  %792 = vst [vmem:[%s3957_s28 + $0x90] sm:$0xff] %v733_v28  ;;  %v743_v33 = vld [vmem:[%s3961_s9 + $0xc0] sm:$0xff] }
  0xd3   : >> { %794 = vst [vmem:[%s3957_s28 + $0x98] sm:$0xff] %v735_v29  ;;  %v745_v34 = vld [vmem:[%s3961_s9 + $0xc8] sm:$0xff]  ;;  %v747_v35 = vld [vmem:[%s3961_s9 + $0xd0] sm:$0xff]  ;;  %796 = vst [vmem:[%s3957_s28 + $0xa0] sm:$0xff] %v737_v30 }
  0xd4   : >> { %798 = vst [vmem:[%s3957_s28 + $0xa8] sm:$0xff] %v739_v31  ;;  %800 = vst [vmem:[%s3957_s28 + $0xb0] sm:$0xff] %v741_v32  ;;  %v749_v36 = vld [vmem:[%s3961_s9 + $0xd8] sm:$0xff]  ;;  %v751_v37 = vld [vmem:[%s3961_s9 + $0xe0] sm:$0xff] }
  0xd5   : >> { %v753_v38 = vld [vmem:[%s3961_s9 + $0xe8] sm:$0xff]  ;;  %802 = vst [vmem:[%s3957_s28 + $0xb8] sm:$0xff] %v743_v33  ;;  %804 = vst [vmem:[%s3957_s28 + $0xc0] sm:$0xff] %v745_v34  ;;  %v755_v39 = vld [vmem:[%s3961_s9 + $0xf0] sm:$0xff]  ;;  %691 = sbr.rel (!%p688_p8) target bundleno = 201 (0xc9), region = 491 }
  0xd6   : >> { %806 = vst [vmem:[%s3957_s28 + $0xc8] sm:$0xff] %v747_v35  ;;  %v757_v40 = vld [vmem:[%s3961_s9 + $0xf8] sm:$0xff]  ;;  %v695_v41 = vld [vmem:[%s3961_s9] sm:$0xff]  ;;  %808 = vst [vmem:[%s3957_s28 + $0xd0] sm:$0xff] %v749_v36 }
  0xd7   : >> { %810 = vst [vmem:[%s3957_s28 + $0xd8] sm:$0xff] %v751_v37  ;;  %812 = vst [vmem:[%s3957_s28 + $0xe0] sm:$0xff] %v753_v38  ;;  %v697_v42 = vld [vmem:[%s3961_s9 + $0x8] sm:$0xff]  ;;  %v817_v43 = vld [vmem:[%s3961_s9 + $0x100] sm:$0xff] }
  0xd8   : >> { %696 = vst [vmem:[%s3957_s28] sm:$0xff] %v695_v41  ;;  %814 = vst [vmem:[%s3957_s28 + $0xe8] sm:$0xff] %v755_v39  ;;  %v819_v44 = vld [vmem:[%s3961_s9 + $0x108] sm:$0xff]  ;;  %v821_v45 = vld [vmem:[%s3961_s9 + $0x110] sm:$0xff]  ;;  %s5732_s9 = smov %s828_s15 }
  0xd9   : >> { %816 = vst [vmem:[%s3957_s28 + $0xf0] sm:$0xff] %v757_v40  ;;  %698 = vst [vmem:[%s3957_s28 + $0x8] sm:$0xff] %v697_v42 }
  0xda   : >> { %818 = vst [vmem:[%s3957_s28 + $0xf8] sm:$0xff] %v817_v43  ;;  %820 = vst [vmem:[%s3957_s28 + $0x100] sm:$0xff] %v819_v44 }
  0xdb   : >> { %822 = vst [vmem:[%s3957_s28 + $0x108] sm:$0xff] %v821_v45  ;;  %s5731_s28 = smov %s829_s10 }
  0xdc PF: > { %s4665_s27 = sand.u32 31, %s682_s0   ;;  %s3028_s26 = sshll.u32 %s4552_s7, 12 }
  0xdd   : > { %s834_s16 = sshra.s32 %s3028_s26, 4  ;;  %p2949_p9 = scmp.le.s32.totalorder %s4665_s27, 0 }
  0xde   : > { %s4669_s14 = scalar_lea.vmem %s4537_s17, %s834_s16   ;;  %s838_s20 = scalar_lea.vmem %s4541_s8, %s834_s16 [#allocation3]  }
  0xdf   : > { %2702 = sbr.rel (%p2949_p9) target bundleno = 240 (0xf0), region = 496  ;;  %s3971_s25 = smov (!%p2949_p9), %s838_s20  }
  0xe0   : > { %s3975_s12 = smov (!%p2949_p9), %s4669_s14   ;;  %s3979_s18 = smov (!%p2949_p9), 0  }
  0xe1   : > { %s3983_s28 = smov (!%p2949_p9), 0  }
  0xe6 LB: >> { %v850_v46 = vld [vmem:[%s3977_s12] sm:$0xff]  ;;  %v852_v47 = vld [vmem:[%s3977_s12 + $0x18] sm:$0xff]  ;;  %s854_s0 = sadd.s32 1, %s3981_s18  ;;  %s844_s28 = sadd.s32 1, %s3985_s28   ;;  %s3985_s28 = sphi %s3983_s28, %s844_s28   ;;  %s3981_s18 = sphi %s3979_s18, %s3980_s18   ;;  %s3977_s12 = sphi %s3975_s12, %s859_s12   ;;  %s3973_s25 = sphi %s3971_s25, %s860_s25  }
  0xe7   : >> { %851 = vst [vmem:[%s3973_s25] sm:$0xff] %v850_v46  ;;  %853 = vst [vmem:[%s3973_s25 + $0x10] sm:$0xff] %v852_v47  ;;  %p855_p10 = scmp.ge.s32.totalorder %s854_s0, %s4665_s27  ;;  %p843_p11 = scmp.ge.s32.totalorder %s844_s28, %s4665_s27 }
  0xe9   : >> { %s5782_s0 = smov (%p855_p10, %s854_s0), 0  ;;  %846 = sbr.rel (!%p843_p11) target bundleno = 230 (0xe6), region = 502 }
  0xea   : >> { %s2950_s7 = sshll.u32 %s5782_s0, 3  ;;  %s3980_s18 = smov %s5782_s0  }
  0xeb   : >> { %s859_s12 = scalar_lea.vmem %s4669_s14, %s2950_s7   ;;  %s860_s25 = scalar_lea.vmem %s838_s20, %s2950_s7 [#allocation3]  }
  0xf0 PF: > { %863 = sbr.rel (%p678_p2) target bundleno = 297 (0x129), region = 127  ;;  %s865_s9 = ssub.s32 (!%p678_p2), %s4539_s11, %s4545_s19 }
  0xf1   : > { %s869_s13 = sshrl.u32 (!%p678_p2), %s4539_s11, 3  ;;  %s4683_s15 = scalar_lea.vmem (!%p678_p2), %s4537_s17, %s865_s9 }
  0xf2   : > { %s4686_s10 = scalar_lea.vmem (!%p678_p2), %s4541_s8, %s865_s9 [#allocation3]  ;;  %s4690_s26 = sshrl.u32 (!%p678_p2), %s869_s13, 5 }
  0xf3   : > { %p2952_p12 = scmp.le.s32.totalorder (!%p678_p2), %s4690_s26, 0 }
  0xf7   : > { %2716 = sbr.rel (%p2952_p12) target bundleno = 273 (0x111), region = 507  ;;  %s5734_s27 = smov (!%p2952_p12), %s4541_s8 }
  0xf8   : > { %s5735_s16 = smov (!%p2952_p12), %s4537_s17  ;;  %s4699_s14 = smov (!%p2952_p12), 0  }
  0xf9   : > { %s4701_s20 = smov (!%p2952_p12), 0  }
  0xfe LB: >> { %v888_v48 = vld [vmem:[%s3993_s16 + $0x18] sm:$0xff]  ;;  %v890_v49 = vld [vmem:[%s3993_s16 + $0x20] sm:$0xff]  ;;  %v892_v50 = vld [vmem:[%s3993_s16 + $0x28] sm:$0xff]  ;;  %s1010_s25 = sadd.s32 1, %s3997_s14  ;;  %s876_s20 = sadd.s32 1, %s4001_s20   ;;  %s4001_s20 = sphi %s4701_s20, %s876_s20   ;;  %s3997_s14 = sphi %s4699_s14, %s5738_s14   ;;  %s3993_s16 = sphi %s5735_s16, %s5737_s16   ;;  %s3989_s27 = sphi %s5734_s27, %s5736_s27  }
  0xff   : >> { %v894_v51 = vld [vmem:[%s3993_s16 + $0x30] sm:$0xff]  ;;  %v896_v52 = vld [vmem:[%s3993_s16 + $0x38] sm:$0xff]  ;;  %v898_v53 = vld [vmem:[%s3993_s16 + $0x40] sm:$0xff]  ;;  %947 = vst [vmem:[%s3989_s27 + $0x10] sm:$0xff] %v888_v48  ;;  %p1011_p13 = scmp.ge.s32.totalorder %s1010_s25, %s4690_s26  ;;  %p875_p0 = scmp.ge.s32.totalorder %s876_s20, %s4690_s26 }
 0x100   : >> { %949 = vst [vmem:[%s3989_s27 + $0x18] sm:$0xff] %v890_v49  ;;  %951 = vst [vmem:[%s3989_s27 + $0x20] sm:$0xff] %v892_v50  ;;  %v900_v54 = vld [vmem:[%s3993_s16 + $0x48] sm:$0xff]  ;;  %v902_v55 = vld [vmem:[%s3993_s16 + $0x50] sm:$0xff] }
 0x101   : >> { %v904_v56 = vld [vmem:[%s3993_s16 + $0x58] sm:$0xff]  ;;  %953 = vst [vmem:[%s3989_s27 + $0x28] sm:$0xff] %v894_v51  ;;  %955 = vst [vmem:[%s3989_s27 + $0x30] sm:$0xff] %v896_v52  ;;  %v906_v57 = vld [vmem:[%s3993_s16 + $0x60] sm:$0xff]  ;;  %s5784_s25 = smov (%p1011_p13, %s1010_s25), 0 }
 0x102   : >> { %957 = vst [vmem:[%s3989_s27 + $0x38] sm:$0xff] %v898_v53  ;;  %v908_v58 = vld [vmem:[%s3993_s16 + $0x68] sm:$0xff]  ;;  %v910_v59 = vld [vmem:[%s3993_s16 + $0x70] sm:$0xff]  ;;  %959 = vst [vmem:[%s3989_s27 + $0x40] sm:$0xff] %v900_v54  ;;  %s2953_s12 = sshll.u32 %s5784_s25, 8  ;;  %s5738_s14 = smov %s5784_s25 }
 0x103   : >> { %961 = vst [vmem:[%s3989_s27 + $0x48] sm:$0xff] %v902_v55  ;;  %963 = vst [vmem:[%s3989_s27 + $0x50] sm:$0xff] %v904_v56  ;;  %v912_v60 = vld [vmem:[%s3993_s16 + $0x78] sm:$0xff]  ;;  %v914_v61 = vld [vmem:[%s3993_s16 + $0x80] sm:$0xff]  ;;  %s1015_s18 = scalar_lea.vmem %s4537_s17, %s2953_s12   ;;  %s1016_s28 = scalar_lea.vmem %s4541_s8, %s2953_s12 [#allocation3]  }
 0x104   : >> { %v916_v62 = vld [vmem:[%s3993_s16 + $0x88] sm:$0xff]  ;;  %965 = vst [vmem:[%s3989_s27 + $0x58] sm:$0xff] %v906_v57  ;;  %967 = vst [vmem:[%s3989_s27 + $0x60] sm:$0xff] %v908_v58  ;;  %v918_v63 = vld [vmem:[%s3993_s16 + $0x90] sm:$0xff] }
 0x105   : >> { %969 = vst [vmem:[%s3989_s27 + $0x68] sm:$0xff] %v910_v59  ;;  %v920_v0 = vld [vmem:[%s3993_s16 + $0x98] sm:$0xff]  ;;  %v922_v1 = vld [vmem:[%s3993_s16 + $0xa0] sm:$0xff]  ;;  %971 = vst [vmem:[%s3989_s27 + $0x70] sm:$0xff] %v912_v60 }
 0x106   : >> { %973 = vst [vmem:[%s3989_s27 + $0x78] sm:$0xff] %v914_v61  ;;  %975 = vst [vmem:[%s3989_s27 + $0x80] sm:$0xff] %v916_v62  ;;  %v924_v2 = vld [vmem:[%s3993_s16 + $0xa8] sm:$0xff]  ;;  %v926_v3 = vld [vmem:[%s3993_s16 + $0xb0] sm:$0xff] }
 0x107   : >> { %v928_v4 = vld [vmem:[%s3993_s16 + $0xb8] sm:$0xff]  ;;  %977 = vst [vmem:[%s3989_s27 + $0x88] sm:$0xff] %v918_v63  ;;  %979 = vst [vmem:[%s3989_s27 + $0x90] sm:$0xff] %v920_v0  ;;  %v930_v5 = vld [vmem:[%s3993_s16 + $0xc0] sm:$0xff] }
 0x108   : >> { %981 = vst [vmem:[%s3989_s27 + $0x98] sm:$0xff] %v922_v1  ;;  %v932_v6 = vld [vmem:[%s3993_s16 + $0xc8] sm:$0xff]  ;;  %v934_v7 = vld [vmem:[%s3993_s16 + $0xd0] sm:$0xff]  ;;  %983 = vst [vmem:[%s3989_s27 + $0xa0] sm:$0xff] %v924_v2 }
 0x109   : >> { %985 = vst [vmem:[%s3989_s27 + $0xa8] sm:$0xff] %v926_v3  ;;  %987 = vst [vmem:[%s3989_s27 + $0xb0] sm:$0xff] %v928_v4  ;;  %v936_v8 = vld [vmem:[%s3993_s16 + $0xd8] sm:$0xff]  ;;  %v938_v9 = vld [vmem:[%s3993_s16 + $0xe0] sm:$0xff] }
 0x10a   : >> { %v940_v10 = vld [vmem:[%s3993_s16 + $0xe8] sm:$0xff]  ;;  %989 = vst [vmem:[%s3989_s27 + $0xb8] sm:$0xff] %v930_v5  ;;  %991 = vst [vmem:[%s3989_s27 + $0xc0] sm:$0xff] %v932_v6  ;;  %v942_v11 = vld [vmem:[%s3993_s16 + $0xf0] sm:$0xff]  ;;  %878 = sbr.rel (!%p875_p0) target bundleno = 254 (0xfe), region = 513 }
 0x10b   : >> { %993 = vst [vmem:[%s3989_s27 + $0xc8] sm:$0xff] %v934_v7  ;;  %v944_v12 = vld [vmem:[%s3993_s16 + $0xf8] sm:$0xff]  ;;  %v882_v13 = vld [vmem:[%s3993_s16] sm:$0xff]  ;;  %995 = vst [vmem:[%s3989_s27 + $0xd0] sm:$0xff] %v936_v8 }
 0x10c   : >> { %997 = vst [vmem:[%s3989_s27 + $0xd8] sm:$0xff] %v938_v9  ;;  %999 = vst [vmem:[%s3989_s27 + $0xe0] sm:$0xff] %v940_v10  ;;  %v884_v14 = vld [vmem:[%s3993_s16 + $0x8] sm:$0xff]  ;;  %v1004_v15 = vld [vmem:[%s3993_s16 + $0x100] sm:$0xff] }
 0x10d   : >> { %883 = vst [vmem:[%s3989_s27] sm:$0xff] %v882_v13  ;;  %1001 = vst [vmem:[%s3989_s27 + $0xe8] sm:$0xff] %v942_v11  ;;  %v1006_v16 = vld [vmem:[%s3993_s16 + $0x108] sm:$0xff]  ;;  %v1008_v17 = vld [vmem:[%s3993_s16 + $0x110] sm:$0xff]  ;;  %s5737_s16 = smov %s1015_s18 }
 0x10e   : >> { %1003 = vst [vmem:[%s3989_s27 + $0xf0] sm:$0xff] %v944_v12  ;;  %885 = vst [vmem:[%s3989_s27 + $0x8] sm:$0xff] %v884_v14 }
 0x10f   : >> { %1005 = vst [vmem:[%s3989_s27 + $0xf8] sm:$0xff] %v1004_v15  ;;  %1007 = vst [vmem:[%s3989_s27 + $0x100] sm:$0xff] %v1006_v16 }
 0x110   : >> { %1009 = vst [vmem:[%s3989_s27 + $0x108] sm:$0xff] %v1008_v17  ;;  %s5736_s27 = smov %s1016_s28 }
 0x111 PF: > { %s4803_s0 = sand.u32 31, %s869_s13   ;;  %s3030_s7 = sshll.u32 %s4690_s26, 12 }
 0x112   : > { %s1021_s9 = sshra.s32 %s3030_s7, 4  ;;  %p2958_p1 = scmp.le.s32.totalorder %s4803_s0, 0 }
 0x113   : > { %s4807_s12 = scalar_lea.vmem %s4537_s17, %s1021_s9   ;;  %s1025_s28 = scalar_lea.vmem %s4541_s8, %s1021_s9 [#allocation3]  }
 0x114   : > { %2730 = sbr.rel (%p2958_p1) target bundleno = 293 (0x125), region = 518  ;;  %s4003_s25 = smov (!%p2958_p1), %s1025_s28  }
 0x115   : > { %s4007_s20 = smov (!%p2958_p1), %s4807_s12   ;;  %s4011_s18 = smov (!%p2958_p1), 0  }
 0x116   : > { %s4015_s27 = smov (!%p2958_p1), 0  }
 0x11b LB: >> { %v1037_v18 = vld [vmem:[%s4009_s20] sm:$0xff]  ;;  %v1039_v19 = vld [vmem:[%s4009_s20 + $0x18] sm:$0xff]  ;;  %s1041_s13 = sadd.s32 1, %s4013_s18  ;;  %s1031_s27 = sadd.s32 1, %s4017_s27   ;;  %s4017_s27 = sphi %s4015_s27, %s1031_s27   ;;  %s4013_s18 = sphi %s4011_s18, %s4012_s18   ;;  %s4009_s20 = sphi %s4007_s20, %s1046_s20   ;;  %s4005_s25 = sphi %s4003_s25, %s1047_s25  }
 0x11c   : >> { %1038 = vst [vmem:[%s4005_s25] sm:$0xff] %v1037_v18  ;;  %1040 = vst [vmem:[%s4005_s25 + $0x10] sm:$0xff] %v1039_v19  ;;  %p1042_p2 = scmp.ge.s32.totalorder %s1041_s13, %s4803_s0  ;;  %p1030_p3 = scmp.ge.s32.totalorder %s1031_s27, %s4803_s0 }
 0x11e   : >> { %s5786_s13 = smov (%p1042_p2, %s1041_s13), 0  ;;  %1033 = sbr.rel (!%p1030_p3) target bundleno = 283 (0x11b), region = 524 }
 0x11f   : >> { %s2959_s26 = sshll.u32 %s5786_s13, 3  ;;  %s4012_s18 = smov %s5786_s13  }
 0x120   : >> { %s1046_s20 = scalar_lea.vmem %s4807_s12, %s2959_s26   ;;  %s1047_s25 = scalar_lea.vmem %s1025_s28, %s2959_s26 [#allocation3]  }
 0x125 PF: > { %s4149_s16 = smov 0  }
 0x126   : > { %s1048_s14 = sshllo.u32 %s4149_s16, %s4545_s19 }
 0x127   : > { %v1057_v20 = vld [vmem:[%s4683_s15] sm:%s1048_s14]  ;;  %v1059_v21 = vld [vmem:[%s4683_s15 + $0x18] sm:%s1048_s14] }
 0x128   : > { %1058 = vst [vmem:[%s4686_s10] sm:%s1048_s14] %v1057_v20  ;;  %1060 = vst [vmem:[%s4686_s10 + $0x10] sm:%s1048_s14] %v1059_v21 }
 0x129 PF: > { %p2961_p6 = scmp.ge.u32.totalorder %s4539_s11, 8 }
 0x12a   : > { %s4150_s7 = smov (!%p2961_p6), 0  }
 0x12b   : > { %663 = sbr.rel (%p2961_p6) target bundleno = 306 (0x132), region = 98  ;;  %s664_s0 = sshllo.u32 (!%p2961_p6), %s4150_s7, %s4539_s11 }
 0x12c   : > { %v673_v22 = vld [vmem:[%s4537_s17] sm:%s664_s0] (!%p2961_p6)  ;;  %v675_v23 = vld [vmem:[%s4537_s17 + $0x18] sm:%s664_s0] (!%p2961_p6) }
 0x12d   : > { %674 = vst [vmem:[%s4541_s8] sm:%s664_s0] (!%p2961_p6), %v673_v22  ;;  %676 = vst [vmem:[%s4541_s8 + $0x10] sm:%s664_s0] (!%p2961_p6), %v675_v23 }
 0x132 PF: > { %1098 = sbr.rel (!%p4223_p4) target bundleno = 478 (0x1de), region = 160  ;;  %s1100_s19 = sand.u32 (%p4223_p4), 1, %s3885_s22  }
 0x133   : > { %s2962_s15 = sshll.u32 (%p4223_p4), %s3889_s23, 1  ;;  %s3037_s10 = smul.u32 (%p4223_p4), 48, %s1100_s19 }
 0x134   : > { %s1104_s9 = ssub.s32 (%p4223_p4), 3, %s2962_s15  ;;  %s3032_s12 = sshll.u32 (%p4223_p4), %s3889_s23, 4 }
 0x135   : > { %p1105_p7 = scmp.lt.s32.totalorder (%p4223_p4), %s1104_s9, 2  ;;  %s4834_s17 = scalar_lea.vmem (%p4223_p4), %s5708_s4, %s3032_s12  }
 0x136   : > { %s4838_s29 = scalar_lea.vmem (%p4223_p4), [#allocation4], %s3037_s10  }
 0x139   : > { %s5788_s9 = smov (!%p1105_p7, %s1104_s9), 2 }
 0x13a   : > { %s1107_s8 = smul.u32 384, %s5788_s9  ;;  %s4836_s25 = sshll.u32 %s5788_s9, 3 }
 0x13c   : > { %p2966_p4 = scmp.eq.s32.totalorder %s1107_s8, 0 }
 0x13d   : > { %p1115_p8 = scmp.lt.u32.totalorder (!%p2966_p4), %s4836_s25, 8 }
 0x13e   : > { %1114 = sbr.rel (%p2966_p4) target bundleno = 478 (0x1de), region = 164 }
 0x145   : > { %1118 = sbr.rel (%p1115_p8) target bundleno = 469 (0x1d5), region = 168  ;;  %s4842_s20 = sand.u32 (!%p1115_p8), 7, %s4836_s25  }
 0x146   : > { %p1138_p9 = scmp.eq.s32.totalorder (!%p1115_p8), %s4842_s20, 0  ;;  %p2967_p10 = scmp.ne.s32.totalorder (!%p1115_p8), %s4842_s20, 0 }
 0x14c   : > { %1141 = sbr.rel (%p2967_p10) target bundleno = 397 (0x18d), region = 183  ;;  %s1142_s18 = sshrl.u32 (!%p2967_p10), %s4836_s25, 3 }
 0x14d   : > { %3595 = sdivrem.u32 (!%p2967_p10), %s1142_s18, 24 }
 0x156   : > { %s4849_s27 = spop.drf %3595 }
 0x157   : > { %p2968_p11 = scmp.le.s32.totalorder %s4849_s27, 0 }
 0x158   : > { %s5739_s13 = smov (!%p2968_p11), %s4838_s29  ;;  %s5740_s26 = smov (!%p2968_p11), %s4834_s17 }
 0x159   : > { %2744 = sbr.rel (%p2968_p11) target bundleno = 368 (0x170), region = 529  ;;  %s4858_s16 = smov (!%p2968_p11), 0  }
 0x15a   : > { %s4860_s14 = smov (!%p2968_p11), 0  }
 0x160 LB: >> { %v1168_v24 = vld [vmem:[%s4025_s26 + $0x30] sm:$0xff]  ;;  %v1170_v25 = vld [vmem:[%s4025_s26 + $0x38] sm:$0xff]  ;;  %v1172_v26 = vld [vmem:[%s4025_s26 + $0x40] sm:$0xff]  ;;  %s1300_s7 = sadd.s32 1, %s4029_s16  ;;  %s1150_s14 = sadd.s32 1, %s4033_s14   ;;  %s4033_s14 = sphi %s4860_s14, %s1150_s14   ;;  %s4029_s16 = sphi %s4858_s16, %s5742_s16   ;;  %s4025_s26 = sphi %s5740_s26, %s1305_s26   ;;  %s4021_s13 = sphi %s5739_s13, %s5741_s13  }
 0x161   : >> { %v1174_v27 = vld [vmem:[%s4025_s26 + $0x48] sm:$0xff]  ;;  %v1176_v28 = vld [vmem:[%s4025_s26 + $0x50] sm:$0xff]  ;;  %v1178_v29 = vld [vmem:[%s4025_s26 + $0x58] sm:$0xff]  ;;  %1253 = vst [vmem:[%s4021_s13 + $0x20] sm:$0xff] %v1168_v24  ;;  %p1301_p12 = scmp.ge.s32.totalorder %s1300_s7, %s4849_s27  ;;  %p1149_p13 = scmp.ge.s32.totalorder %s1150_s14, %s4849_s27 }
 0x162   : >> { %1255 = vst [vmem:[%s4021_s13 + $0x28] sm:$0xff] %v1170_v25  ;;  %1257 = vst [vmem:[%s4021_s13 + $0x30] sm:$0xff] %v1172_v26  ;;  %v1180_v30 = vld [vmem:[%s4025_s26 + $0x60] sm:$0xff]  ;;  %v1182_v31 = vld [vmem:[%s4025_s26 + $0x68] sm:$0xff] }
 0x163   : >> { %v1184_v32 = vld [vmem:[%s4025_s26 + $0x70] sm:$0xff]  ;;  %1259 = vst [vmem:[%s4021_s13 + $0x38] sm:$0xff] %v1174_v27  ;;  %1261 = vst [vmem:[%s4021_s13 + $0x40] sm:$0xff] %v1176_v28  ;;  %v1186_v33 = vld [vmem:[%s4025_s26 + $0x78] sm:$0xff]  ;;  %s5790_s7 = smov (%p1301_p12, %s1300_s7), 0 }
 0x164   : >> { %1263 = vst [vmem:[%s4021_s13 + $0x48] sm:$0xff] %v1178_v29  ;;  %v1188_v34 = vld [vmem:[%s4025_s26 + $0x80] sm:$0xff]  ;;  %v1190_v35 = vld [vmem:[%s4025_s26 + $0x88] sm:$0xff]  ;;  %1265 = vst [vmem:[%s4021_s13 + $0x50] sm:$0xff] %v1180_v30  ;;  %s1303_s0 = smul.u32 192, %s5790_s7  ;;  %s5742_s16 = smov %s5790_s7 }
 0x165   : >> { %1267 = vst [vmem:[%s4021_s13 + $0x58] sm:$0xff] %v1182_v31  ;;  %1269 = vst [vmem:[%s4021_s13 + $0x60] sm:$0xff] %v1184_v32  ;;  %v1192_v36 = vld [vmem:[%s4025_s26 + $0x90] sm:$0xff]  ;;  %v1194_v37 = vld [vmem:[%s4025_s26 + $0x98] sm:$0xff] }
 0x166   : >> { %v1196_v38 = vld [vmem:[%s4025_s26 + $0xa0] sm:$0xff]  ;;  %1271 = vst [vmem:[%s4021_s13 + $0x68] sm:$0xff] %v1186_v33  ;;  %1273 = vst [vmem:[%s4021_s13 + $0x70] sm:$0xff] %v1188_v34  ;;  %v1198_v39 = vld [vmem:[%s4025_s26 + $0xa8] sm:$0xff]  ;;  %s1306_s19 = scalar_lea.vmem %s4838_s29, %s1303_s0 [#allocation4]  }
 0x167   : >> { %1275 = vst [vmem:[%s4021_s13 + $0x78] sm:$0xff] %v1190_v35  ;;  %v1200_v40 = vld [vmem:[%s4025_s26 + $0xb0] sm:$0xff]  ;;  %v1202_v41 = vld [vmem:[%s4025_s26 + $0xb8] sm:$0xff]  ;;  %1277 = vst [vmem:[%s4021_s13 + $0x80] sm:$0xff] %v1192_v36 }
 0x168   : >> { %1279 = vst [vmem:[%s4021_s13 + $0x88] sm:$0xff] %v1194_v37  ;;  %1281 = vst [vmem:[%s4021_s13 + $0x90] sm:$0xff] %v1196_v38  ;;  %v1162_v42 = vld [vmem:[%s4025_s26 + $0x18] sm:$0xff]  ;;  %v1246_v43 = vld [vmem:[%s4025_s26 + $0xc0] sm:$0xff] }
 0x169   : >> { %v1248_v44 = vld [vmem:[%s4025_s26 + $0xc8] sm:$0xff]  ;;  %1283 = vst [vmem:[%s4021_s13 + $0x98] sm:$0xff] %v1198_v39  ;;  %1285 = vst [vmem:[%s4021_s13 + $0xa0] sm:$0xff] %v1200_v40  ;;  %v1250_v45 = vld [vmem:[%s4025_s26 + $0xd0] sm:$0xff]  ;;  %1152 = sbr.rel (!%p1149_p13) target bundleno = 352 (0x160), region = 535 }
 0x16a   : >> { %1287 = vst [vmem:[%s4021_s13 + $0xa8] sm:$0xff] %v1202_v41  ;;  %v1156_v46 = vld [vmem:[%s4025_s26] sm:$0xff]  ;;  %v1158_v47 = vld [vmem:[%s4025_s26 + $0x8] sm:$0xff]  ;;  %1205 = vst [vmem:[%s4021_s13 + $0x10] sm:$0xff] %v1162_v42 }
 0x16b   : >> { %1289 = vst [vmem:[%s4021_s13 + $0xb0] sm:$0xff] %v1246_v43  ;;  %1291 = vst [vmem:[%s4021_s13 + $0xb8] sm:$0xff] %v1248_v44  ;;  %v1206_v48 = vld [vmem:[%s4025_s26 + $0x20] sm:$0xff]  ;;  %v1294_v49 = vld [vmem:[%s4025_s26 + $0xd8] sm:$0xff] }
 0x16c   : >> { %1157 = vst [vmem:[%s4021_s13] sm:$0xff] %v1156_v46  ;;  %1159 = vst [vmem:[%s4021_s13 + $0x8] sm:$0xff] %v1158_v47  ;;  %v1296_v50 = vld [vmem:[%s4025_s26 + $0xe0] sm:$0xff]  ;;  %v1298_v51 = vld [vmem:[%s4025_s26 + $0xe8] sm:$0xff]  ;;  %s1305_s26 = scalar_lea.vmem %s4834_s17, %s1303_s0  }
 0x16d   : >> { %1293 = vst [vmem:[%s4021_s13 + $0xc0] sm:$0xff] %v1250_v45  ;;  %1207 = vst [vmem:[%s4021_s13 + $0x18] sm:$0xff] %v1206_v48 }
 0x16e   : >> { %1295 = vst [vmem:[%s4021_s13 + $0xc8] sm:$0xff] %v1294_v49  ;;  %1297 = vst [vmem:[%s4021_s13 + $0xd0] sm:$0xff] %v1296_v50 }
 0x16f   : >> { %1299 = vst [vmem:[%s4021_s13 + $0xd8] sm:$0xff] %v1298_v51  ;;  %s5741_s13 = smov %s1306_s19 }
 0x170 PF: > { %3597 = sdivrem.u32 %s1142_s18, 24 }
 0x171   : > { %s2969_s15 = smul.u32 3072, %s4849_s27 }
 0x173   : > { %s1311_s10 = sshra.s32 %s2969_s15, 4 }
 0x174   : > { %s4952_s9 = scalar_lea.vmem %s4834_s17, %s1311_s10   ;;  %s4955_s12 = scalar_lea.vmem %s4838_s29, %s1311_s10 [#allocation4]  }
 0x179   : > { %s4957_s11 = spop.drf %3597 }
 0x17a   : > { %p2971_p0 = scmp.le.s32.totalorder %s4957_s11, 0 }
 0x17b   : > { %s5743_s28 = smov (!%p2971_p0), %s4955_s12  ;;  %s4039_s8 = smov (!%p2971_p0), %s4952_s9  }
 0x17c   : > { %2758 = sbr.rel (%p2971_p0) target bundleno = 397 (0x18d), region = 540  ;;  %s4043_s13 = smov (!%p2971_p0), 0  }
 0x17d   : > { %s4047_s26 = smov (!%p2971_p0), 0  }
 0x183 LB: >> { %v1327_v52 = vld [vmem:[%s4041_s8] sm:$0xff]  ;;  %v1329_v53 = vld [vmem:[%s4041_s8 + $0x18] sm:$0xff]  ;;  %v1331_v54 = vld [vmem:[%s4041_s8 + $0x30] sm:$0xff]  ;;  %s1333_s18 = sadd.s32 1, %s4045_s13  ;;  %s1321_s26 = sadd.s32 1, %s4049_s26   ;;  %s4049_s26 = sphi %s4047_s26, %s1321_s26   ;;  %s4045_s13 = sphi %s4043_s13, %s4044_s13   ;;  %s4041_s8 = sphi %s4039_s8, %s1338_s8   ;;  %s4037_s28 = sphi %s5743_s28, %s1339_s28  }
 0x184   : >> { %1328 = vst [vmem:[%s4037_s28] sm:$0xff] %v1327_v52  ;;  %1330 = vst [vmem:[%s4037_s28 + $0x10] sm:$0xff] %v1329_v53  ;;  %p1334_p1 = scmp.ge.s32.totalorder %s1333_s18, %s4957_s11  ;;  %p1320_p2 = scmp.ge.s32.totalorder %s1321_s26, %s4957_s11 }
 0x185   : >> { %1332 = vst [vmem:[%s4037_s28 + $0x20] sm:$0xff] %v1331_v54 }
 0x186   : >> { %s5792_s18 = smov (%p1334_p1, %s1333_s18), 0  ;;  %1323 = sbr.rel (!%p1320_p2) target bundleno = 387 (0x183), region = 546 }
 0x187   : >> { %s2972_s27 = sshll.u32 %s5792_s18, 3  ;;  %s4044_s13 = smov %s5792_s18  }
 0x188   : >> { %s1338_s8 = scalar_lea.vmem %s4952_s9, %s2972_s27   ;;  %s1339_s28 = scalar_lea.vmem %s4955_s12, %s2972_s27 [#allocation4]  }
 0x18d PF: > { %1342 = sbr.rel (%p1138_p9) target bundleno = 469 (0x1d5), region = 201  ;;  %s1344_s16 = ssub.s32 (!%p1138_p9), %s4836_s25, %s4842_s20 }
 0x18e   : > { %s1348_s14 = sshrl.u32 (!%p1138_p9), %s4836_s25, 3  ;;  %s4977_s7 = scalar_lea.vmem (!%p1138_p9), %s4834_s17, %s1344_s16 }
 0x18f   : > { %s4980_s0 = scalar_lea.vmem (!%p1138_p9), %s4838_s29, %s1344_s16 [#allocation4]  ;;  %3599 = sdivrem.u32 (!%p1138_p9), %s1348_s14, 24 }
 0x198   : > { %s4984_s19 = spop.drf %3599 }
 0x199   : > { %p2974_p3 = scmp.le.s32.totalorder %s4984_s19, 0 }
 0x19a   : > { %s5744_s15 = smov (!%p2974_p3), %s4838_s29  ;;  %s5745_s10 = smov (!%p2974_p3), %s4834_s17 }
 0x19b   : > { %2772 = sbr.rel (%p2974_p3) target bundleno = 434 (0x1b2), region = 551  ;;  %s4993_s9 = smov (!%p2974_p3), 0  }
 0x19c   : > { %s4995_s12 = smov (!%p2974_p3), 0  }
 0x1a2 LB: >> { %v1374_v55 = vld [vmem:[%s4057_s10 + $0x30] sm:$0xff]  ;;  %v1376_v56 = vld [vmem:[%s4057_s10 + $0x38] sm:$0xff]  ;;  %v1378_v57 = vld [vmem:[%s4057_s10 + $0x40] sm:$0xff]  ;;  %s1506_s11 = sadd.s32 1, %s4061_s9  ;;  %s1356_s12 = sadd.s32 1, %s4065_s12   ;;  %s4065_s12 = sphi %s4995_s12, %s1356_s12   ;;  %s4061_s9 = sphi %s4993_s9, %s5747_s9   ;;  %s4057_s10 = sphi %s5745_s10, %s1511_s10   ;;  %s4053_s15 = sphi %s5744_s15, %s5746_s15  }
 0x1a3   : >> { %v1380_v58 = vld [vmem:[%s4057_s10 + $0x48] sm:$0xff]  ;;  %v1382_v59 = vld [vmem:[%s4057_s10 + $0x50] sm:$0xff]  ;;  %v1384_v60 = vld [vmem:[%s4057_s10 + $0x58] sm:$0xff]  ;;  %1459 = vst [vmem:[%s4053_s15 + $0x20] sm:$0xff] %v1374_v55  ;;  %p1507_p6 = scmp.ge.s32.totalorder %s1506_s11, %s4984_s19  ;;  %p1355_p7 = scmp.ge.s32.totalorder %s1356_s12, %s4984_s19 }
 0x1a4   : >> { %1461 = vst [vmem:[%s4053_s15 + $0x28] sm:$0xff] %v1376_v56  ;;  %1463 = vst [vmem:[%s4053_s15 + $0x30] sm:$0xff] %v1378_v57  ;;  %v1386_v61 = vld [vmem:[%s4057_s10 + $0x60] sm:$0xff]  ;;  %v1388_v62 = vld [vmem:[%s4057_s10 + $0x68] sm:$0xff] }
 0x1a5   : >> { %v1390_v63 = vld [vmem:[%s4057_s10 + $0x70] sm:$0xff]  ;;  %1465 = vst [vmem:[%s4053_s15 + $0x38] sm:$0xff] %v1380_v58  ;;  %1467 = vst [vmem:[%s4053_s15 + $0x40] sm:$0xff] %v1382_v59  ;;  %v1392_v0 = vld [vmem:[%s4057_s10 + $0x78] sm:$0xff]  ;;  %s5794_s11 = smov (%p1507_p6, %s1506_s11), 0 }
 0x1a6   : >> { %1469 = vst [vmem:[%s4053_s15 + $0x48] sm:$0xff] %v1384_v60  ;;  %v1394_v1 = vld [vmem:[%s4057_s10 + $0x80] sm:$0xff]  ;;  %v1396_v2 = vld [vmem:[%s4057_s10 + $0x88] sm:$0xff]  ;;  %1471 = vst [vmem:[%s4053_s15 + $0x50] sm:$0xff] %v1386_v61  ;;  %s1509_s28 = smul.u32 192, %s5794_s11  ;;  %s5747_s9 = smov %s5794_s11 }
 0x1a7   : >> { %1473 = vst [vmem:[%s4053_s15 + $0x58] sm:$0xff] %v1388_v62  ;;  %1475 = vst [vmem:[%s4053_s15 + $0x60] sm:$0xff] %v1390_v63  ;;  %v1398_v3 = vld [vmem:[%s4057_s10 + $0x90] sm:$0xff]  ;;  %v1400_v4 = vld [vmem:[%s4057_s10 + $0x98] sm:$0xff] }
 0x1a8   : >> { %v1402_v5 = vld [vmem:[%s4057_s10 + $0xa0] sm:$0xff]  ;;  %1477 = vst [vmem:[%s4053_s15 + $0x68] sm:$0xff] %v1392_v0  ;;  %1479 = vst [vmem:[%s4053_s15 + $0x70] sm:$0xff] %v1394_v1  ;;  %v1404_v6 = vld [vmem:[%s4057_s10 + $0xa8] sm:$0xff]  ;;  %s1512_s8 = scalar_lea.vmem %s4838_s29, %s1509_s28 [#allocation4]  }
 0x1a9   : >> { %1481 = vst [vmem:[%s4053_s15 + $0x78] sm:$0xff] %v1396_v2  ;;  %v1406_v7 = vld [vmem:[%s4057_s10 + $0xb0] sm:$0xff]  ;;  %v1408_v8 = vld [vmem:[%s4057_s10 + $0xb8] sm:$0xff]  ;;  %1483 = vst [vmem:[%s4053_s15 + $0x80] sm:$0xff] %v1398_v3 }
 0x1aa   : >> { %1485 = vst [vmem:[%s4053_s15 + $0x88] sm:$0xff] %v1400_v4  ;;  %1487 = vst [vmem:[%s4053_s15 + $0x90] sm:$0xff] %v1402_v5  ;;  %v1368_v9 = vld [vmem:[%s4057_s10 + $0x18] sm:$0xff]  ;;  %v1452_v10 = vld [vmem:[%s4057_s10 + $0xc0] sm:$0xff] }
 0x1ab   : >> { %v1454_v11 = vld [vmem:[%s4057_s10 + $0xc8] sm:$0xff]  ;;  %1489 = vst [vmem:[%s4053_s15 + $0x98] sm:$0xff] %v1404_v6  ;;  %1491 = vst [vmem:[%s4053_s15 + $0xa0] sm:$0xff] %v1406_v7  ;;  %v1456_v12 = vld [vmem:[%s4057_s10 + $0xd0] sm:$0xff]  ;;  %1358 = sbr.rel (!%p1355_p7) target bundleno = 418 (0x1a2), region = 557 }
 0x1ac   : >> { %1493 = vst [vmem:[%s4053_s15 + $0xa8] sm:$0xff] %v1408_v8  ;;  %v1362_v13 = vld [vmem:[%s4057_s10] sm:$0xff]  ;;  %v1364_v14 = vld [vmem:[%s4057_s10 + $0x8] sm:$0xff]  ;;  %1411 = vst [vmem:[%s4053_s15 + $0x10] sm:$0xff] %v1368_v9 }
 0x1ad   : >> { %1495 = vst [vmem:[%s4053_s15 + $0xb0] sm:$0xff] %v1452_v10  ;;  %1497 = vst [vmem:[%s4053_s15 + $0xb8] sm:$0xff] %v1454_v11  ;;  %v1412_v15 = vld [vmem:[%s4057_s10 + $0x20] sm:$0xff]  ;;  %v1500_v16 = vld [vmem:[%s4057_s10 + $0xd8] sm:$0xff] }
 0x1ae   : >> { %1363 = vst [vmem:[%s4053_s15] sm:$0xff] %v1362_v13  ;;  %1365 = vst [vmem:[%s4053_s15 + $0x8] sm:$0xff] %v1364_v14  ;;  %v1502_v17 = vld [vmem:[%s4057_s10 + $0xe0] sm:$0xff]  ;;  %v1504_v18 = vld [vmem:[%s4057_s10 + $0xe8] sm:$0xff]  ;;  %s1511_s10 = scalar_lea.vmem %s4834_s17, %s1509_s28  }
 0x1af   : >> { %1499 = vst [vmem:[%s4053_s15 + $0xc0] sm:$0xff] %v1456_v12  ;;  %1413 = vst [vmem:[%s4053_s15 + $0x18] sm:$0xff] %v1412_v15 }
 0x1b0   : >> { %1501 = vst [vmem:[%s4053_s15 + $0xc8] sm:$0xff] %v1500_v16  ;;  %1503 = vst [vmem:[%s4053_s15 + $0xd0] sm:$0xff] %v1502_v17 }
 0x1b1   : >> { %1505 = vst [vmem:[%s4053_s15 + $0xd8] sm:$0xff] %v1504_v18  ;;  %s5746_s15 = smov %s1512_s8 }
 0x1b2 PF: > { %3601 = sdivrem.u32 %s1348_s14, 24 }
 0x1b3   : > { %s2975_s13 = smul.u32 3072, %s4984_s19 }
 0x1b5   : > { %s1517_s26 = sshra.s32 %s2975_s13, 4 }
 0x1b6   : > { %s5087_s18 = scalar_lea.vmem %s4834_s17, %s1517_s26   ;;  %s5090_s27 = scalar_lea.vmem %s4838_s29, %s1517_s26 [#allocation4]  }
 0x1bb   : > { %s5092_s16 = spop.drf %3601 }
 0x1bc   : > { %p2977_p4 = scmp.le.s32.totalorder %s5092_s16, 0 }
 0x1bd   : > { %s5748_s15 = smov (!%p2977_p4), %s5090_s27  ;;  %s4071_s10 = smov (!%p2977_p4), %s5087_s18  }
 0x1be   : > { %2786 = sbr.rel (%p2977_p4) target bundleno = 463 (0x1cf), region = 562  ;;  %s4075_s9 = smov (!%p2977_p4), 0  }
 0x1bf   : > { %s4079_s12 = smov (!%p2977_p4), 0  }
 0x1c5 LB: >> { %v1533_v19 = vld [vmem:[%s4073_s10] sm:$0xff]  ;;  %v1535_v20 = vld [vmem:[%s4073_s10 + $0x18] sm:$0xff]  ;;  %v1537_v21 = vld [vmem:[%s4073_s10 + $0x30] sm:$0xff]  ;;  %s1539_s14 = sadd.s32 1, %s4077_s9  ;;  %s1527_s12 = sadd.s32 1, %s4081_s12   ;;  %s4081_s12 = sphi %s4079_s12, %s1527_s12   ;;  %s4077_s9 = sphi %s4075_s9, %s4076_s9   ;;  %s4073_s10 = sphi %s4071_s10, %s1544_s10   ;;  %s4069_s15 = sphi %s5748_s15, %s1545_s15  }
 0x1c6   : >> { %1534 = vst [vmem:[%s4069_s15] sm:$0xff] %v1533_v19  ;;  %1536 = vst [vmem:[%s4069_s15 + $0x10] sm:$0xff] %v1535_v20  ;;  %p1540_p8 = scmp.ge.s32.totalorder %s1539_s14, %s5092_s16  ;;  %p1526_p9 = scmp.ge.s32.totalorder %s1527_s12, %s5092_s16 }
 0x1c7   : >> { %1538 = vst [vmem:[%s4069_s15 + $0x20] sm:$0xff] %v1537_v21 }
 0x1c8   : >> { %s5796_s14 = smov (%p1540_p8, %s1539_s14), 0  ;;  %1529 = sbr.rel (!%p1526_p9) target bundleno = 453 (0x1c5), region = 568 }
 0x1c9   : >> { %s2978_s19 = sshll.u32 %s5796_s14, 3  ;;  %s4076_s9 = smov %s5796_s14  }
 0x1ca   : >> { %s1544_s10 = scalar_lea.vmem %s5087_s18, %s2978_s19   ;;  %s1545_s15 = scalar_lea.vmem %s5090_s27, %s2978_s19 [#allocation4]  }
 0x1cf PF: > { %s4151_s11 = smov 0  }
 0x1d0   : > { %s1546_s28 = sshllo.u32 %s4151_s11, %s4842_s20 }
 0x1d1   : > { %v1555_v22 = vld [vmem:[%s4977_s7] sm:%s1546_s28]  ;;  %v1557_v23 = vld [vmem:[%s4977_s7 + $0x18] sm:%s1546_s28] }
 0x1d2   : > { %1556 = vst [vmem:[%s4980_s0] sm:%s1546_s28] %v1555_v22  ;;  %1558 = vst [vmem:[%s4980_s0 + $0x10] sm:%s1546_s28] %v1557_v23 }
 0x1d3   : > { %v1559_v24 = vld [vmem:[%s4977_s7 + $0x30] sm:%s1546_s28] }
 0x1d4   : > { %1560 = vst [vmem:[%s4980_s0 + $0x20] sm:%s1546_s28] %v1559_v24 }
 0x1d5 PF: > { %p2980_p10 = scmp.ge.u32.totalorder %s4836_s25, 8 }
 0x1d6   : > { %s4152_s8 = smov (!%p2980_p10), 0  }
 0x1d7   : > { %1121 = sbr.rel (%p2980_p10) target bundleno = 478 (0x1de), region = 172  ;;  %s1122_s20 = sshllo.u32 (!%p2980_p10), %s4152_s8, %s4836_s25 }
 0x1d8   : > { %v1131_v25 = vld [vmem:[%s4834_s17] sm:%s1122_s20] (!%p2980_p10)  ;;  %v1133_v26 = vld [vmem:[%s4834_s17 + $0x18] sm:%s1122_s20] (!%p2980_p10) }
 0x1d9   : > { %1132 = vst [vmem:[%s4838_s29] sm:%s1122_s20] (!%p2980_p10), %v1131_v25  ;;  %1134 = vst [vmem:[%s4838_s29 + $0x10] sm:%s1122_s20] (!%p2980_p10), %v1133_v26 }
 0x1da   : > { %v1135_v27 = vld [vmem:[%s4834_s17 + $0x30] sm:%s1122_s20] (!%p2980_p10) }
 0x1db   : > { %1136 = vst [vmem:[%s4838_s29 + $0x20] sm:%s1122_s20] (!%p2980_p10), %v1135_v27 }
 0x1de PF: > { %p2981_p11 = scmp.ge.s32.totalorder %s3889_s23, 1  ;;  %p1563_p12 = scmp.lt.s32.totalorder %s3889_s23, 3 }
 0x1e0   : > { %p1564_p13 = pnand %p2981_p11, %p1563_p12 }
 0x1e1   : > { %s5124_s7 = sand.u32 (!%p1564_p13), 1, %s3881_s21   ;;  %s5127_s25 = sshll.u32 (!%p1564_p13), %s4208_s24, 1  ;;  %v1694_v28 = vlaneseq (!%p1564_p13)  ;;  %vm1815_vm0 = vcmask (!%p1564_p13), 1043456   ;;  %vm1926_vm1 = vcmask (!%p1564_p13), 1040384  }
 0x1e2   : > { %1567 = sbr.rel (%p1564_p13) target bundleno = 924 (0x39c), region = 226  ;;  %s2982_s17 = sshll.u32 (!%p1564_p13), %s5124_s7, 5 }
 0x1e3   : > { %s3038_s29 = smul.u32 (!%p1564_p13), 48, %s5124_s7  ;;  %v5132_v29 = vand.u32 (!%p1564_p13), 127, %v1694_v28  ;;  %v5135_v30 = vshrl.u32 (!%p1564_p13), %v1694_v28, 7  ;;  %p1657_p0 = scmp.lt.s32.totalorder (!%p1564_p13), %s5127_s25, 2  ;;  %vm1997_vm12 = vcmp.lt.s32.totalorder (!%p1564_p13), %v1694_v28, 256 }
 0x1e4   : > { %s5150_s13 = scalar_lea.vmem (!%p1564_p13), [#allocation2], %s2982_s17  ;;  %s5154_s26 = scalar_lea.vmem (!%p1564_p13), [#allocation3], %s2982_s17 }
 0x1e5   : > { %v5142_v31 = vadd.s32 (!%p1564_p13), 128, %v5132_v29  ;;  %v1723_v32 = vsub.s32 (!%p1564_p13), 0, %v5135_v30  ;;  %v1727_v33 = vsub.s32 (!%p1564_p13), 1, %v5135_v30  ;;  %s5146_s21 = scalar_lea.vmem (!%p1564_p13), [#allocation4], %s3038_s29  ;;  %v1718_v35 = vld [vmem:[%s5150_s13] sm:$0xf] (!%p1564_p13) }
 0x1e6   : > { %v1876_v34 = vld [vmem:[%s5146_s21] sm:$0xff] (!%p1564_p13)  ;;  %v1719_v36 = vld [vmem:[%s5150_s13 + $0x8] sm:$0xf] (!%p1564_p13)  ;;  %v1748_v41 = vld [vmem:[%s5150_s13 + $0x8] sm:$0xf0] (!%p1564_p13)  ;;  %s2990_s14 = sshll.u32 (!%p1564_p13), %s4208_s24, 8 }
 0x1e7   : > { %v1737_v37 = vld [vmem:[%s5154_s26] sm:$0xf] (!%p1564_p13)  ;;  %v1738_v38 = vld [vmem:[%s5154_s26 + $0x8] sm:$0xf] (!%p1564_p13)  ;;  %v1747_v40 = vld [vmem:[%s5150_s13] sm:$0xf0] (!%p1564_p13)  ;;  %v1878_v46 = vmul.f32 (!%p1564_p13), %v1876_v34, %v1876_v34  ;;  %v1698_v21 = vstv (!%p1564_p13), %s2990_s14 }
 0x1e8   : > { %v1877_v39 = vld [vmem:[%s5146_s21 + $0x8] sm:$0xff] (!%p1564_p13)  ;;  %v1772_v42 = vld [vmem:[%s5154_s26] sm:$0xf0] (!%p1564_p13)  ;;  %v1883_v54 = vld [vmem:[%s5146_s21 + $0x18] sm:$0xff] (!%p1564_p13)  ;;  %s2984_s19 = sshll.u32 (!%p1564_p13), %s5124_s7, 1  ;;  %p1685_p1 = scmp.lt.s32.totalorder (!%p1564_p13), %s4208_s24, 1 }
 0x1e9   : > { %s5139_s23 = scalar_select %p1657_p0, %s5127_s25, 2  ;;  %v1773_v43 = vld [vmem:[%s5154_s26 + $0x8] sm:$0xf0]  ;;  %v1879_v47 = vmul.f32 %v1877_v39, %v1877_v39  ;;  %v1882_v53 = vld [vmem:[%s5146_s21 + $0x10] sm:$0xff]  ;;  %v1885_v59 = vmul.f32 %v1883_v54, %v1883_v54  ;;  %v1789_v0 = vld [vmem:[%s5150_s13 + $0x18] sm:$0xf] }
 0x1ea   : > { %v1788_v55 = vld [vmem:[%s5150_s13 + $0x10] sm:$0xf]  ;;  %v1884_v58 = vmul.f32 %v1882_v53, %v1882_v53  ;;  %v1808_v11 = vld [vmem:[%s5154_s26 + $0x18] sm:$0xf]  ;;  %s5257_s11 = scalar_lea.vmem [#allocation5], %s2984_s19   ;;  %s5798_s24 = smov (!%p1685_p1, %s4208_s24), 1 }
 0x1eb   : > { %s2986_s0 = sshll.u32 %s5139_s23, 2  ;;  %s2988_s15 = sshll.u32 %s5139_s23, 3  ;;  %v1807_v5 = vld [vmem:[%s5154_s26 + $0x10] sm:$0xf]  ;;  %v1889_v12 = vld [vmem:[%s5146_s21 + $0x28] sm:$0xff]  ;;  %vm2005_vm13 = vcmp.eq.s32.totalorder %v5135_v30, 3 }
 0x1ec   : > { %s1660_s16 = scalar_lea.vmem %s5706_s2, %s2986_s0  ;;  %s5174_s12 = scalar_lea.vmem %s5707_s3, %s2988_s15  ;;  %v1888_v6 = vld [vmem:[%s5146_s21 + $0x20] sm:$0xff]  ;;  %v1886_v27 = vadd.f32 %v1884_v58, %v1878_v46  ;;  %v5188_v46 = vadd.s32 %v1698_v21, %v5132_v29  ;;  %vm2004_vm14 = vcmp.eq.s32.totalorder %v5135_v30, 2  ;;  %vm2003_vm15 = vcmp.eq.s32.totalorder %v5135_v30, 1 }
 0x1ed   : > { %v1717_v44 = vld [vmem:[%s1660_s16] ss:$4 sm:$0x3]  ;;  %v2991_v45 = vld [vmem:[%s1660_s16 + $0x1] ss:$4 sm:$0x3]  ;;  %s5288_s26 = scalar_lea.vmem (%p4227_p5), %s5710_s6, %s5127_s25  }
 0x1ee   : > { %v1724_v48 = vrot.slane %v1717_v44, %v1723_v32  ;;  %v1728_v49 = vrot.slane %v1717_v44, %v1727_v33  ;;  %v1753_v50 = vrot.slane %v2991_v45, %v1723_v32  ;;  %v1757_v51 = vrot.slane %v2991_v45, %v1727_v33  ;;  %v2992_v52 = vld [vmem:[%s1660_s16 + $0x2] ss:$4 sm:$0x3]  ;;  %v1706_v25 = vld [vmem:[%s5174_s12 + $0x8] sm:$0xf0]  ;;  %s2989_s7 = sshll.u32 %s5798_s24, 3 }
 0x1ef   : > { %v1794_v56 = vrot.slane %v2992_v52, %v1723_v32  ;;  %v1798_v57 = vrot.slane %v2992_v52, %v1727_v33  ;;  %v1705_v17 = vld [vmem:[%s5174_s12] sm:$0xf0]  ;;  %v1887_v32 = vadd.f32 %v1885_v59, %v1879_v47  ;;  %v1890_v33 = vmul.f32 %v1888_v6, %v1888_v6  ;;  %v1703_v54 = vld [vmem:[%s5174_s12] sm:$0xf]  ;;  %s1688_s21 = scalar_lea.vmem %s5709_s5, %s2989_s7  ;;  %s2030_s24 = ssub.s32 (%p4227_p5), 3, %s5127_s25 }
 0x1f0   : > { %v1731_v60 = vsub.f32 %v1718_v35, %v1724_v48  ;;  %v1732_v61 = vsub.f32 %v1719_v36, %v1728_v49  ;;  %v1739_v62 = vsub.f32 %v1737_v37, %v1724_v48  ;;  %v1740_v63 = vsub.f32 %v1738_v38, %v1728_v49  ;;  %p2031_p2 = scmp.lt.s32.totalorder (%p4227_p5), %s2030_s24, 2 }
 0x1f1   : > { %v1760_v1 = vsub.f32 %v1747_v40, %v1753_v50  ;;  %v1761_v2 = vsub.f32 %v1748_v41, %v1757_v51  ;;  %v1774_v3 = vsub.f32 %v1772_v42, %v1753_v50  ;;  %v1775_v4 = vsub.f32 %v1773_v43, %v1757_v51 }
 0x1f2   : > { %v1733_v7 = vand.u32 2147483647, %v1731_v60  ;;  %v1734_v8 = vand.u32 2147483647, %v1732_v61  ;;  %v1741_v9 = vand.u32 2147483647, %v1739_v62  ;;  %v1801_v10 = vsub.f32 %v1788_v55, %v1794_v56 }
 0x1f3   : > { %v1742_v13 = vand.u32 2147483647, %v1740_v63  ;;  %v1762_v14 = vand.u32 2147483647, %v1760_v1  ;;  %v1763_v15 = vand.u32 2147483647, %v1761_v2  ;;  %v1802_v16 = vsub.f32 %v1789_v0, %v1798_v57 }
 0x1f4   : > { %v1776_v18 = vand.u32 2147483647, %v1774_v3  ;;  %v1777_v19 = vand.u32 2147483647, %v1775_v4  ;;  %v1803_v20 = vand.u32 2147483647, %v1801_v10  ;;  %v1809_v26 = vsub.f32 %v1807_v5, %v1794_v56 }
 0x1f5   : > { %v1766_v22 = vrot.slane %v1762_v14, 4  ;;  %v1767_v23 = vrot.slane %v1763_v15, 4  ;;  %v1804_v24 = vand.u32 2147483647, %v1802_v16  ;;  %v1810_v36 = vsub.f32 %v1808_v11, %v1798_v57  ;;  %v1704_v55 = vld [vmem:[%s5174_s12 + $0x8] sm:$0xf] }
 0x1f6   : > { %v1891_v37 = vmul.f32 %v1889_v12, %v1889_v12  ;;  %v5183_v38 = vadd.f32 %v1890_v33, %v1886_v27  ;;  %v1707_v39 = vsub.f32 1.0, %v1705_v17  ;;  %v1708_v40 = vsub.f32 1.0, %v1706_v25 }
 0x1f7   : > { %v1770_v34 = vadd.f32 %v1766_v22, %v1733_v7  ;;  %v1771_v35 = vadd.f32 %v1767_v23, %v1734_v8  ;;  %v1780_v41 = vrot.slane %v1776_v18, 4  ;;  %v1781_v45 = vrot.slane %v1777_v19, 4 }
 0x1f8   : > { %v5185_v44 = vadd.f32 %v1891_v37, %v1887_v32  ;;  %v5191_v47 = vadd.s32 %v1698_v21, %v5142_v31  ;;  %v1811_v48 = vand.u32 2147483647, %v1809_v26  ;;  %3603 = vrsqrt.f32 %v5183_v38 }
 0x1f9   : > { %v1805_v42 = vadd.f32 %v1803_v20, %v1770_v34  ;;  %v1806_v43 = vadd.f32 %v1804_v24, %v1771_v35  ;;  %v1812_v49 = vand.u32 2147483647, %v1810_v36  ;;  %v1711_v56 = vrot.slane %v1707_v39, 4 }
 0x1fa   : > { %3605 = vrsqrt.f32 %v5185_v44  ;;  %v1712_v29 = vrot.slane %v1708_v40, 4  ;;  %v1784_v57 = vadd.f32 %v1780_v41, %v1741_v9  ;;  %v1785_v58 = vadd.f32 %v1781_v45, %v1742_v13 }
 0x1fb   : > { %v1858_v50 = vsel %vm1815_vm0, %v1805_v42, 0.0  ;;  %v1865_v51 = vsel %vm1815_vm0, %v1806_v43, 0.0  ;;  %vm1896_vm2 = vcmp.eq.f32.partialorder %v5183_v38, inf  ;;  %v4153_v60 = vmov 1966171168  }
 0x1fc   : > { %v1859_v52 = vrot.slane %v1858_v50, 4  ;;  %v1866_v53 = vrot.slane %v1865_v51, 4  ;;  %v5200_v61 = vunpack.c.l.s4 %v4153_v60  ;;  %vm1701_vm3 = vcmp.lt.s32.totalorder %v5188_v46, 300 }
 0x1fd   : > { %vm1702_vm4 = vcmp.lt.s32.totalorder %v5191_v47, 300  ;;  %v1715_v62 = vmul.f32 %v1711_v56, %v1703_v54  ;;  %v1716_v63 = vmul.f32 %v1712_v29, %v1704_v55  ;;  %v1813_v0 = vadd.f32 %v1811_v48, %v1784_v57 }
 0x1fe   : > { %v1860_v31 = vadd.f32 %v1859_v52, %v1858_v50  ;;  %v1867_v59 = vadd.f32 %v1866_v53, %v1865_v51  ;;  %v1814_v1 = vadd.f32 %v1812_v49, %v1785_v58  ;;  %vm1898_vm5 = vcmp.eq.f32.partialorder %v5183_v38, 0.0 }
 0x1ff   : > { %v1899_v4 = vand.u32 2147483648, %v5183_v38  ;;  %v1816_v5 = vsel %vm1815_vm0, %v1715_v62, 0.0  ;;  %v1823_v6 = vsel %vm1815_vm0, %v1716_v63, 0.0  ;;  %v1830_v7 = vmul.f32 %v1813_v0, %v1715_v62 }
 0x200   : > { %v1861_v2 = vrot.slane %v1860_v31, 2  ;;  %v1868_v3 = vrot.slane %v1867_v59, 2  ;;  %v1831_v8 = vmul.f32 %v1814_v1, %v1716_v63  ;;  %v1817_v11 = vrot.slane %v1816_v5, 4 }
 0x201   : > { %v1824_v12 = vrot.slane %v1823_v6, 4  ;;  %vm1903_vm6 = vcmp.eq.f32.partialorder %v5185_v44, inf  ;;  %vm1905_vm7 = vcmp.eq.f32.partialorder %v5185_v44, 0.0  ;;  %v1832_v13 = vsel %vm1815_vm0, %v1830_v7, 0.0 }
 0x202   : > { %v1862_v9 = vadd.f32 %v1861_v2, %v1860_v31  ;;  %v1869_v10 = vadd.f32 %v1868_v3, %v1867_v59  ;;  %v1839_v14 = vsel %vm1815_vm0, %v1831_v8, 0.0  ;;  %v3604_v15 = vpop.eup %3603  ;;  %v1818_v18 = vadd.f32 %v1817_v11, %v1816_v5 }
 0x203   : > { %v1825_v19 = vadd.f32 %v1824_v12, %v1823_v6  ;;  %v1895_v21 = vmul.f32 %v3604_v15, %v5183_v38  ;;  %v1906_v22 = vand.u32 2147483648, %v5185_v44  ;;  %v1833_v23 = vrot.slane %v1832_v13, 4 }
 0x204   : > { %v1863_v16 = vrot.slane %v1862_v9, 1  ;;  %v1870_v17 = vrot.slane %v1869_v10, 1  ;;  %v3606_v20 = vpop.eup %3605  ;;  %v1840_v24 = vrot.slane %v1839_v14, 4  ;;  %v1819_v32 = vrot.slane %v1818_v18, 2 }
 0x205   : > { %v1902_v27 = vmul.f32 %v3606_v20, %v5185_v44  ;;  %v1897_v33 = vsel %vm1896_vm2, %v5183_v38, %v1895_v21  ;;  %v1826_v34 = vrot.slane %v1825_v19, 2  ;;  %v1834_v35 = vadd.f32 %v1833_v23, %v1832_v13 }
 0x206   : > { %v1864_v25 = vadd.f32 %v1863_v16, %v1862_v9  ;;  %v1871_v26 = vadd.f32 %v1870_v17, %v1869_v10  ;;  %v1841_v36 = vadd.f32 %v1840_v24, %v1839_v14  ;;  %v1900_v40 = vsel %vm1898_vm5, %v1899_v4, %v1897_v33 }
 0x207   : > { %v1904_v41 = vsel %vm1903_vm6, %v5185_v44, %v1902_v27  ;;  %v2993_v48 = vadd.f32 -1.0, %v1900_v40  ;;  %v1820_v51 = vadd.f32 %v1819_v32, %v1818_v18  ;;  %v1827_v52 = vadd.f32 %v1826_v34, %v1825_v19 }
 0x208   : > { %v1872_v37 = vsel %vm1701_vm3, %v1864_v25, 0.0  ;;  %v1873_v39 = vsel %vm1702_vm4, %v1871_v26, 0.0  ;;  %v1907_v45 = vsel %vm1905_vm7, %v1906_v22, %v1904_v41  ;;  %v1835_v29 = vrot.slane %v1834_v35, 2 }
 0x209   : > { %v1927_v42 = vsel %vm1926_vm1, %v1872_v37, 0.0  ;;  %v1928_v43 = vsel %vm1926_vm1, %v1873_v39, 0.0  ;;  %v2994_v50 = vadd.f32 -1.0, %v1907_v45  ;;  %v1910_v53 = vmul.f32 %v2993_v48, %v2993_v48 }
 0x20a   : > { %v1929_v49 = vadd.f32 %v1928_v43, %v1927_v42  ;;  %v1821_v54 = vrot.slane %v1820_v51, 1  ;;  %v1828_v55 = vrot.slane %v1827_v52, 1  ;;  %v1982_v57 = vunpack.c.0.s8 %v5200_v61 }
 0x20b   : > { %v1911_v38 = vmul.f32 %v2994_v50, %v2994_v50  ;;  %v1912_v56 = vrot.slane %v1910_v53, 4  ;;  %v1842_v60 = vrot.slane %v1841_v36, 2  ;;  %v1836_v0 = vadd.f32 %v1835_v29, %v1834_v35 }
 0x20c   : > { %1930 = vadd.xlane.f32.xlu0 %v1929_v49  ;;  %v1822_v31 = vadd.f32 %v1821_v54, %v1820_v51  ;;  %v1829_v59 = vadd.f32 %v1828_v55, %v1827_v52  ;;  %v4154_v2 = vmov 0.0   ;;  %v1985_v61 = vsub.s32 %v1982_v57, %v5135_v30 }
 0x20d   : > { %v1918_v58 = vrot.slane %v1911_v38, 4  ;;  %v1913_v44 = vadd.f32 %v1912_v56, %v1910_v53  ;;  %v1843_v5 = vadd.f32 %v1842_v60, %v1841_v36  ;;  %v1837_v16 = vrot.slane %v1836_v0, 1 }
 0x20e   : > { %vm1846_vm8 = vcmp.gt.f32.partialorder %v1822_v31, 0.001  ;;  %vm1847_vm9 = vcmp.gt.f32.partialorder %v1829_v59, 0.001  ;;  %v1874_v21 = vsel %vm1701_vm3, %v1822_v31, 0.0  ;;  %v1875_v22 = vsel %vm1702_vm4, %v1829_v59, 0.0 }
 0x20f   : > { %v1919_v62 = vadd.f32 %v1918_v58, %v1911_v38  ;;  %v1914_v63 = vrot.slane %v1913_v44, 2  ;;  %vm5234_vm10 = vmand %vm1846_vm8, %vm1701_vm3  ;;  %v1975_v3 = vsel %vm1846_vm8, 1.0, %v4154_v2  ;;  %v1976_v8 = vsel %vm1847_vm9, 1.0, %v4154_v2 }
 0x210   : > { %vm5241_vm11 = vmand %vm1847_vm9, %vm1702_vm4  ;;  %v1850_v7 = vsel %vm5234_vm10, %v1822_v31, 1.0  ;;  %v1979_v11 = vcombine.low %v1975_v3, %v1976_v8  ;;  %v1844_v18 = vrot.slane %v1843_v5, 1  ;;  %v1838_v25 = vadd.f32 %v1837_v16, %v1836_v0 }
 0x211   : > { %v1920_v4 = vrot.slane %v1919_v62, 2  ;;  %v1915_v9 = vadd.f32 %v1914_v63, %v1913_v44  ;;  %v1851_v10 = vsel %vm5241_vm11, %v1829_v59, 1.0  ;;  %3607 = vrcp.f32 %v1850_v7 }
 0x212   : > { %3609 = vrcp.f32 %v1851_v10  ;;  %v1986_v14 = vrot.slane %v1979_v11, %v1985_v61  ;;  %v1845_v27 = vadd.f32 %v1844_v18, %v1843_v5  ;;  %v1963_v32 = vsel %vm1926_vm1, %v1874_v21, 0.0 }
 0x213   : > { %v1921_v12 = vadd.f32 %v1920_v4, %v1919_v62  ;;  %v1916_v13 = vrot.slane %v1915_v9, 1  ;;  %v1964_v33 = vsel %vm1926_vm1, %v1875_v22, 0.0  ;;  %vm2002_vm0 = vcmp.eq.s32.totalorder %v5135_v30, 0 }
 0x214   : > { %v1993_v19 = vrot.slane %v1986_v14, %v1985_v61  ;;  %v1965_v37 = vadd.f32 %v1964_v33, %v1963_v32 }
 0x215   : > { %v1922_v15 = vrot.slane %v1921_v12, 1  ;;  %v1917_v17 = vadd.f32 %v1916_v13, %v1915_v9 }
 0x216   : > { %1999 = vst.msk [vmem:[%s5257_s11] sm:$0x3] %vm1997_vm12, %v1993_v19 }
 0x217   : > { %v1923_v20 = vadd.f32 %v1922_v15, %v1921_v12  ;;  %v1924_v23 = vsel %vm1701_vm3, %v1917_v17, 0.0 }
 0x218   : > { %v1951_v24 = vsel %vm1926_vm1, %v1924_v23, 0.0 }
 0x219   : > { %v1925_v28 = vsel %vm1702_vm4, %v1923_v20, 0.0 }
 0x21a   : > { %v1952_v26 = vsel %vm1926_vm1, %v1925_v28, 0.0 }
 0x21b   : > { %v1953_v34 = vadd.f32 %v1952_v26, %v1951_v24  ;;  %v3608_v46 = vpop.eup %3607 }
 0x21c   : > { %v3610_v35 = vpop.eup %3609  ;;  %v1853_v36 = vmul.f32 %v3608_v46, %v1838_v25 }
 0x21d   : > { %1954 = vadd.xlane.f32.xlu1 %v1953_v34  ;;  %v1855_v39 = vmul.f32 %v3610_v35, %v1845_v27 }
 0x21e   : > { %v1856_v47 = vsel %vm5234_vm10, %v1853_v36, 0.0 }
 0x21f   : > { %v1857_v40 = vsel %vm5241_vm11, %v1855_v39, 0.0  ;;  %v1939_v41 = vsel %vm1926_vm1, %v1856_v47, 0.0 }
 0x220   : > { %v1940_v42 = vsel %vm1926_vm1, %v1857_v40, 0.0 }
 0x221   : > { %1966 = vadd.xlane.f32.xlu1 %v1965_v37  ;;  %v1941_v43 = vadd.f32 %v1940_v42, %v1939_v41 }
 0x223   : > { %1942 = vadd.xlane.f32.xlu0 %v1941_v43 }
 0x299   : > { %v1931_v45 = vpop.xlane.xlu0 %1930 }
 0x29a   : > { %v1932_v48 = vrot.slane %v1931_v45, 4 }
 0x29c   : > { %v1933_v49 = vadd.f32 %v1932_v48, %v1931_v45 }
 0x29e   : > { %v1934_v50 = vrot.slane %v1933_v49, 2 }
 0x2a0   : > { %v1935_v51 = vadd.f32 %v1934_v50, %v1933_v49 }
 0x2a2   : > { %v1936_v52 = vrot.slane %v1935_v51, 1 }
 0x2a4   : > { %v1937_v53 = vadd.f32 %v1936_v52, %v1935_v51 }
 0x2a6   : > { %3039 = vpush %v1937_v53 }
 0x2aa   : > { %v1955_v38 = vpop.xlane.xlu1 %1954 }
 0x2ab   : > { %v1956_v54 = vrot.slane %v1955_v38, 4 }
 0x2ad   : > { %v1957_v55 = vadd.f32 %v1956_v54, %v1955_v38 }
 0x2ae   : > { %v1967_v56 = vpop.xlane.xlu1 %1966 }
 0x2af   : > { %v1958_v29 = vrot.slane %v1957_v55, 2  ;;  %v1968_v57 = vrot.slane %v1967_v56, 4 }
 0x2b0   : > { %v1943_v58 = vpop.xlane.xlu0 %1942 }
 0x2b1   : > { %v1969_v31 = vadd.f32 %v1968_v57, %v1967_v56  ;;  %v1944_v59 = vrot.slane %v1943_v58, 4  ;;  %v1959_v44 = vadd.f32 %v1958_v29, %v1957_v55 }
 0x2b3   : > { %v1970_v60 = vrot.slane %v1969_v31, 2  ;;  %v1945_v62 = vadd.f32 %v1944_v59, %v1943_v58  ;;  %v1960_v1 = vrot.slane %v1959_v44, 1 }
 0x2b5   : > { %v1971_v63 = vadd.f32 %v1970_v60, %v1969_v31  ;;  %v1946_v0 = vrot.slane %v1945_v62, 2  ;;  %v1961_v4 = vadd.f32 %v1960_v1, %v1959_v44 }
 0x2b7   : > { %v1947_v2 = vadd.f32 %v1946_v0, %v1945_v62  ;;  %v1972_v3 = vrot.slane %v1971_v63, 1 }
 0x2b9   : > { %v1948_v61 = vrot.slane %v1947_v2, 1  ;;  %v1973_v6 = vadd.f32 %v1972_v3, %v1971_v63 }
 0x2bb   : > { %v1949_v5 = vadd.f32 %v1948_v61, %v1947_v2 }
 0x2bd   : > { %3041 = vpush %v1949_v5 }
 0x2be   : > { %3043 = vpush %v1961_v4 }
 0x2bf   : > { %3045 = vpush %v1973_v6 }
 0x2d7   : > { %s3040_s28 = spop %3039 }
 0x2d8   : > { %v2012_v12 = vstv %s3040_s28 }
 0x2ee   : > { %s3042_s8 = spop %3041 }
 0x2ef   : > { %s3044_s20 = spop %3043  ;;  %v2010_v10 = vstv %s3042_s8 }
 0x2f0   : > { %s3046_s17 = spop %3045  ;;  %v2008_v8 = vstv %s3044_s20  ;;  %2028 = sbr.rel (!%p4227_p5) target bundleno = 924 (0x39c), region = 246 }
 0x2f1   : > { %v2006_v7 = vstv %s3046_s17 }
 0x2f2   : > { %v2007_v9 = vsel %vm2005_vm13, %v2006_v7, 0.0 }
 0x2f3   : > { %v2009_v11 = vsel %vm2004_vm14, %v2008_v8, %v2007_v9 }
 0x2f4   : > { %v2011_v13 = vsel %vm2003_vm15, %v2010_v10, %v2009_v11 }
 0x2f5   : > { %v2013_v14 = vsel %vm2002_vm0, %v2012_v12, %v2011_v13 }
 0x2f6   : > { %2014 = vst [vmem:[%s1688_s21] sm:$0xff] %v2013_v14 }
 0x2f7   : > { %s5800_s24 = smov (!%p2031_p2, %s2030_s24), 2 }
 0x2f8   : > { %s2997_s18 = sshll.u32 %s5800_s24, 4 }
 0x2f9   : > { %p2999_p3 = scmp.eq.s32.totalorder %s2997_s18, 0 }
 0x2fa   : > { %p2039_p6 = scmp.lt.u32.totalorder (!%p2999_p3), %s5800_s24, 8 }
 0x2fb   : > { %2038 = sbr.rel (%p2999_p3) target bundleno = 924 (0x39c), region = 250 }
 0x302   : > { %2042 = sbr.rel (%p2039_p6) target bundleno = 915 (0x393), region = 254  ;;  %s5295_s30 = sand.u32 (!%p2039_p6), 7, %s5800_s24  }
 0x303   : > { %p2058_p5 = scmp.eq.s32.totalorder (!%p2039_p6), %s5295_s30, 0  ;;  %p3000_p7 = scmp.ne.s32.totalorder (!%p2039_p6), %s5295_s30, 0 }
 0x309   : > { %2061 = sbr.rel (%p3000_p7) target bundleno = 844 (0x34c), region = 269  ;;  %s2062_s25 = sshrl.u32 (!%p3000_p7), %s5800_s24, 3 }
 0x30a   : > { %s5302_s27 = sshrl.u32 (!%p3000_p7), %s2062_s25, 6 }
 0x30b   : > { %p3001_p4 = scmp.le.s32.totalorder (!%p3000_p7), %s5302_s27, 0 }
 0x310   : > { %2800 = sbr.rel (%p3001_p4) target bundleno = 824 (0x338), region = 573  ;;  %s5753_s16 = smov (!%p3001_p4), %s5288_s26 }
 0x311   : > { %s5754_s15 = smov (!%p3001_p4), %s5257_s11  ;;  %s5311_s10 = smov (!%p3001_p4), 0  }
 0x312   : > { %s5313_s9 = smov (!%p3001_p4), 0  }
 0x317 LB: >> { %v2075_v30 = vld [vmem:[%s4089_s15] sm:$0xff]  ;;  %v2077_v15 = vld [vmem:[%s4089_s15 + $0x8] sm:$0xff]  ;;  %v2079_v16 = vld [vmem:[%s4089_s15 + $0x10] sm:$0xff]  ;;  %s2203_s12 = sadd.s32 1, %s4093_s10  ;;  %s2069_s9 = sadd.s32 1, %s4097_s9   ;;  %s4097_s9 = sphi %s5313_s9, %s2069_s9   ;;  %s4093_s10 = sphi %s5311_s10, %s5757_s10   ;;  %s4089_s15 = sphi %s5754_s15, %s5756_s15   ;;  %s4085_s16 = sphi %s5753_s16, %s5755_s16  }
 0x318   : >> { %2076 = vst [vmem:[%s4085_s16] sm:$0xff] %v2075_v30  ;;  %2078 = vst [vmem:[%s4085_s16 + $0x8] sm:$0xff] %v2077_v15  ;;  %v2081_v17 = vld [vmem:[%s4089_s15 + $0x18] sm:$0xff]  ;;  %v2083_v18 = vld [vmem:[%s4089_s15 + $0x20] sm:$0xff]  ;;  %p2204_p8 = scmp.ge.s32.totalorder %s2203_s12, %s5302_s27  ;;  %p2068_p9 = scmp.ge.s32.totalorder %s2069_s9, %s5302_s27 }
 0x319   : >> { %2080 = vst [vmem:[%s4085_s16 + $0x10] sm:$0xff] %v2079_v16  ;;  %v2085_v19 = vld [vmem:[%s4089_s15 + $0x28] sm:$0xff]  ;;  %2082 = vst [vmem:[%s4085_s16 + $0x18] sm:$0xff] %v2081_v17  ;;  %v2087_v20 = vld [vmem:[%s4089_s15 + $0x30] sm:$0xff] }
 0x31a   : >> { %2084 = vst [vmem:[%s4085_s16 + $0x20] sm:$0xff] %v2083_v18  ;;  %2086 = vst [vmem:[%s4085_s16 + $0x28] sm:$0xff] %v2085_v19  ;;  %v2089_v21 = vld [vmem:[%s4089_s15 + $0x38] sm:$0xff]  ;;  %v2091_v22 = vld [vmem:[%s4089_s15 + $0x40] sm:$0xff]  ;;  %s5802_s12 = smov (%p2204_p8, %s2203_s12), 0 }
 0x31b   : >> { %2088 = vst [vmem:[%s4085_s16 + $0x30] sm:$0xff] %v2087_v20  ;;  %2090 = vst [vmem:[%s4085_s16 + $0x38] sm:$0xff] %v2089_v21  ;;  %v2093_v23 = vld [vmem:[%s4089_s15 + $0x48] sm:$0xff]  ;;  %v2095_v28 = vld [vmem:[%s4089_s15 + $0x50] sm:$0xff]  ;;  %s3002_s14 = sshll.u32 %s5802_s12, 9  ;;  %s5757_s10 = smov %s5802_s12 }
 0x31c   : >> { %2092 = vst [vmem:[%s4085_s16 + $0x40] sm:$0xff] %v2091_v22  ;;  %v2097_v24 = vld [vmem:[%s4089_s15 + $0x58] sm:$0xff]  ;;  %2094 = vst [vmem:[%s4085_s16 + $0x48] sm:$0xff] %v2093_v23  ;;  %v2099_v25 = vld [vmem:[%s4089_s15 + $0x60] sm:$0xff]  ;;  %s5369_s19 = scalar_lea.vmem %s5257_s11, %s3002_s14 [#allocation5]   ;;  %s5372_s28 = scalar_lea.vmem %s5288_s26, %s3002_s14  }
 0x31d   : >> { %2096 = vst [vmem:[%s4085_s16 + $0x50] sm:$0xff] %v2095_v28  ;;  %2098 = vst [vmem:[%s4085_s16 + $0x58] sm:$0xff] %v2097_v24  ;;  %v2101_v26 = vld [vmem:[%s4089_s15 + $0x68] sm:$0xff]  ;;  %v2103_v27 = vld [vmem:[%s4089_s15 + $0x70] sm:$0xff] }
 0x31e   : >> { %2100 = vst [vmem:[%s4085_s16 + $0x60] sm:$0xff] %v2099_v25  ;;  %2102 = vst [vmem:[%s4085_s16 + $0x68] sm:$0xff] %v2101_v26  ;;  %v2105_v32 = vld [vmem:[%s4089_s15 + $0x78] sm:$0xff]  ;;  %v2107_v33 = vld [vmem:[%s4089_s15 + $0x80] sm:$0xff] }
 0x31f   : >> { %2104 = vst [vmem:[%s4085_s16 + $0x70] sm:$0xff] %v2103_v27  ;;  %v2109_v34 = vld [vmem:[%s4089_s15 + $0x88] sm:$0xff]  ;;  %2106 = vst [vmem:[%s4085_s16 + $0x78] sm:$0xff] %v2105_v32  ;;  %v2111_v46 = vld [vmem:[%s4089_s15 + $0x90] sm:$0xff] }
 0x320   : >> { %2108 = vst [vmem:[%s4085_s16 + $0x80] sm:$0xff] %v2107_v33  ;;  %2110 = vst [vmem:[%s4085_s16 + $0x88] sm:$0xff] %v2109_v34  ;;  %v2113_v35 = vld [vmem:[%s4089_s15 + $0x98] sm:$0xff]  ;;  %v2115_v36 = vld [vmem:[%s4089_s15 + $0xa0] sm:$0xff] }
 0x321   : >> { %2112 = vst [vmem:[%s4085_s16 + $0x90] sm:$0xff] %v2111_v46  ;;  %2114 = vst [vmem:[%s4085_s16 + $0x98] sm:$0xff] %v2113_v35  ;;  %v2117_v37 = vld [vmem:[%s4089_s15 + $0xa8] sm:$0xff]  ;;  %v2119_v39 = vld [vmem:[%s4089_s15 + $0xb0] sm:$0xff] }
 0x322   : >> { %2116 = vst [vmem:[%s4085_s16 + $0xa0] sm:$0xff] %v2115_v36  ;;  %v2121_v47 = vld [vmem:[%s4089_s15 + $0xb8] sm:$0xff]  ;;  %2118 = vst [vmem:[%s4085_s16 + $0xa8] sm:$0xff] %v2117_v37  ;;  %v2123_v40 = vld [vmem:[%s4089_s15 + $0xc0] sm:$0xff] }
 0x323   : >> { %2120 = vst [vmem:[%s4085_s16 + $0xb0] sm:$0xff] %v2119_v39  ;;  %2122 = vst [vmem:[%s4085_s16 + $0xb8] sm:$0xff] %v2121_v47  ;;  %v2125_v41 = vld [vmem:[%s4089_s15 + $0xc8] sm:$0xff]  ;;  %v2127_v42 = vld [vmem:[%s4089_s15 + $0xd0] sm:$0xff] }
 0x324   : >> { %2124 = vst [vmem:[%s4085_s16 + $0xc0] sm:$0xff] %v2123_v40  ;;  %2126 = vst [vmem:[%s4085_s16 + $0xc8] sm:$0xff] %v2125_v41  ;;  %v2129_v43 = vld [vmem:[%s4089_s15 + $0xd8] sm:$0xff]  ;;  %v2131_v45 = vld [vmem:[%s4089_s15 + $0xe0] sm:$0xff] }
 0x325   : >> { %2128 = vst [vmem:[%s4085_s16 + $0xd0] sm:$0xff] %v2127_v42  ;;  %v2133_v48 = vld [vmem:[%s4089_s15 + $0xe8] sm:$0xff]  ;;  %2130 = vst [vmem:[%s4085_s16 + $0xd8] sm:$0xff] %v2129_v43  ;;  %v2135_v49 = vld [vmem:[%s4089_s15 + $0xf0] sm:$0xff] }
 0x326   : >> { %2132 = vst [vmem:[%s4085_s16 + $0xe0] sm:$0xff] %v2131_v45  ;;  %2134 = vst [vmem:[%s4085_s16 + $0xe8] sm:$0xff] %v2133_v48  ;;  %v2137_v50 = vld [vmem:[%s4089_s15 + $0xf8] sm:$0xff]  ;;  %v2139_v51 = vld [vmem:[%s4089_s15 + $0x100] sm:$0xff] }
 0x327   : >> { %2136 = vst [vmem:[%s4085_s16 + $0xf0] sm:$0xff] %v2135_v49  ;;  %2138 = vst [vmem:[%s4085_s16 + $0xf8] sm:$0xff] %v2137_v50  ;;  %v2141_v52 = vld [vmem:[%s4089_s15 + $0x108] sm:$0xff]  ;;  %v2143_v53 = vld [vmem:[%s4089_s15 + $0x110] sm:$0xff] }
 0x328   : >> { %2140 = vst [vmem:[%s4085_s16 + $0x100] sm:$0xff] %v2139_v51  ;;  %v2145_v38 = vld [vmem:[%s4089_s15 + $0x118] sm:$0xff]  ;;  %2142 = vst [vmem:[%s4085_s16 + $0x108] sm:$0xff] %v2141_v52  ;;  %v2147_v54 = vld [vmem:[%s4089_s15 + $0x120] sm:$0xff] }
 0x329   : >> { %2144 = vst [vmem:[%s4085_s16 + $0x110] sm:$0xff] %v2143_v53  ;;  %2146 = vst [vmem:[%s4085_s16 + $0x118] sm:$0xff] %v2145_v38  ;;  %v2149_v55 = vld [vmem:[%s4089_s15 + $0x128] sm:$0xff]  ;;  %v2151_v56 = vld [vmem:[%s4089_s15 + $0x130] sm:$0xff] }
 0x32a   : >> { %2148 = vst [vmem:[%s4085_s16 + $0x120] sm:$0xff] %v2147_v54  ;;  %2150 = vst [vmem:[%s4085_s16 + $0x128] sm:$0xff] %v2149_v55  ;;  %v2153_v29 = vld [vmem:[%s4089_s15 + $0x138] sm:$0xff]  ;;  %v2155_v57 = vld [vmem:[%s4089_s15 + $0x140] sm:$0xff] }
 0x32b   : >> { %2152 = vst [vmem:[%s4085_s16 + $0x130] sm:$0xff] %v2151_v56  ;;  %v2157_v58 = vld [vmem:[%s4089_s15 + $0x148] sm:$0xff]  ;;  %2154 = vst [vmem:[%s4085_s16 + $0x138] sm:$0xff] %v2153_v29  ;;  %v2159_v31 = vld [vmem:[%s4089_s15 + $0x150] sm:$0xff] }
 0x32c   : >> { %2156 = vst [vmem:[%s4085_s16 + $0x140] sm:$0xff] %v2155_v57  ;;  %2158 = vst [vmem:[%s4085_s16 + $0x148] sm:$0xff] %v2157_v58  ;;  %v2161_v59 = vld [vmem:[%s4089_s15 + $0x158] sm:$0xff]  ;;  %v2163_v60 = vld [vmem:[%s4089_s15 + $0x160] sm:$0xff] }
 0x32d   : >> { %2160 = vst [vmem:[%s4085_s16 + $0x150] sm:$0xff] %v2159_v31  ;;  %2162 = vst [vmem:[%s4085_s16 + $0x158] sm:$0xff] %v2161_v59  ;;  %v2165_v44 = vld [vmem:[%s4089_s15 + $0x168] sm:$0xff]  ;;  %v2167_v62 = vld [vmem:[%s4089_s15 + $0x170] sm:$0xff] }
 0x32e   : >> { %2164 = vst [vmem:[%s4085_s16 + $0x160] sm:$0xff] %v2163_v60  ;;  %v2169_v63 = vld [vmem:[%s4089_s15 + $0x178] sm:$0xff]  ;;  %2166 = vst [vmem:[%s4085_s16 + $0x168] sm:$0xff] %v2165_v44  ;;  %v2171_v0 = vld [vmem:[%s4089_s15 + $0x180] sm:$0xff] }
 0x32f   : >> { %2168 = vst [vmem:[%s4085_s16 + $0x170] sm:$0xff] %v2167_v62  ;;  %2170 = vst [vmem:[%s4085_s16 + $0x178] sm:$0xff] %v2169_v63  ;;  %v2173_v1 = vld [vmem:[%s4089_s15 + $0x188] sm:$0xff]  ;;  %v2175_v2 = vld [vmem:[%s4089_s15 + $0x190] sm:$0xff] }
 0x330   : >> { %2172 = vst [vmem:[%s4085_s16 + $0x180] sm:$0xff] %v2171_v0  ;;  %2174 = vst [vmem:[%s4085_s16 + $0x188] sm:$0xff] %v2173_v1  ;;  %v2177_v3 = vld [vmem:[%s4089_s15 + $0x198] sm:$0xff]  ;;  %v2179_v61 = vld [vmem:[%s4089_s15 + $0x1a0] sm:$0xff] }
 0x331   : >> { %2176 = vst [vmem:[%s4085_s16 + $0x190] sm:$0xff] %v2175_v2  ;;  %v2181_v4 = vld [vmem:[%s4089_s15 + $0x1a8] sm:$0xff]  ;;  %2178 = vst [vmem:[%s4085_s16 + $0x198] sm:$0xff] %v2177_v3  ;;  %v2183_v5 = vld [vmem:[%s4089_s15 + $0x1b0] sm:$0xff]  ;;  %2071 = sbr.rel (!%p2068_p9) target bundleno = 791 (0x317), region = 579 }
 0x332   : >> { %2180 = vst [vmem:[%s4085_s16 + $0x1a0] sm:$0xff] %v2179_v61  ;;  %2182 = vst [vmem:[%s4085_s16 + $0x1a8] sm:$0xff] %v2181_v4  ;;  %v2185_v6 = vld [vmem:[%s4089_s15 + $0x1b8] sm:$0xff]  ;;  %v2187_v7 = vld [vmem:[%s4089_s15 + $0x1c0] sm:$0xff] }
 0x333   : >> { %2184 = vst [vmem:[%s4085_s16 + $0x1b0] sm:$0xff] %v2183_v5  ;;  %2186 = vst [vmem:[%s4085_s16 + $0x1b8] sm:$0xff] %v2185_v6  ;;  %v2189_v8 = vld [vmem:[%s4089_s15 + $0x1c8] sm:$0xff]  ;;  %v2191_v9 = vld [vmem:[%s4089_s15 + $0x1d0] sm:$0xff] }
 0x334   : >> { %2188 = vst [vmem:[%s4085_s16 + $0x1c0] sm:$0xff] %v2187_v7  ;;  %v2193_v10 = vld [vmem:[%s4089_s15 + $0x1d8] sm:$0xff]  ;;  %2190 = vst [vmem:[%s4085_s16 + $0x1c8] sm:$0xff] %v2189_v8  ;;  %v2195_v11 = vld [vmem:[%s4089_s15 + $0x1e0] sm:$0xff] }
 0x335   : >> { %2192 = vst [vmem:[%s4085_s16 + $0x1d0] sm:$0xff] %v2191_v9  ;;  %2194 = vst [vmem:[%s4085_s16 + $0x1d8] sm:$0xff] %v2193_v10  ;;  %v2197_v12 = vld [vmem:[%s4089_s15 + $0x1e8] sm:$0xff]  ;;  %v2199_v13 = vld [vmem:[%s4089_s15 + $0x1f0] sm:$0xff] }
 0x336   : >> { %2196 = vst [vmem:[%s4085_s16 + $0x1e0] sm:$0xff] %v2195_v11  ;;  %2198 = vst [vmem:[%s4085_s16 + $0x1e8] sm:$0xff] %v2197_v12  ;;  %v2201_v14 = vld [vmem:[%s4089_s15 + $0x1f8] sm:$0xff]  ;;  %s5756_s15 = smov %s5369_s19 }
 0x337   : >> { %2200 = vst [vmem:[%s4085_s16 + $0x1f0] sm:$0xff] %v2199_v13  ;;  %2202 = vst [vmem:[%s4085_s16 + $0x1f8] sm:$0xff] %v2201_v14  ;;  %s5755_s16 = smov %s5372_s28 }
 0x338 PF: > { %s5478_s8 = sand.u32 63, %s2062_s25   ;;  %s3033_s20 = sshll.u32 %s5302_s27, 13 }
 0x339   : > { %s2214_s7 = sshra.s32 %s3033_s20, 4  ;;  %p3007_p10 = scmp.le.s32.totalorder %s5478_s8, 0 }
 0x33a   : > { %s2215_s17 = scalar_lea.vmem %s5257_s11, %s2214_s7 [#allocation5]   ;;  %s2218_s29 = scalar_lea.vmem %s5288_s26, %s2214_s7  }
 0x33b   : > { %2814 = sbr.rel (%p3007_p10) target bundleno = 844 (0x34c), region = 584  ;;  %s4099_s23 = smov (!%p3007_p10), %s2218_s29  }
 0x33c   : > { %s4103_s21 = smov (!%p3007_p10), %s2215_s17   ;;  %s4107_s0 = smov (!%p3007_p10), 0  }
 0x33d   : > { %s4111_s13 = smov (!%p3007_p10), 0  }
 0x342 LB: >> { %v2230_v30 = vld [vmem:[%s4105_s21] sm:$0xff]  ;;  %s2232_s18 = sadd.s32 1, %s4109_s0  ;;  %s2224_s13 = sadd.s32 1, %s4113_s13   ;;  %s4113_s13 = sphi %s4111_s13, %s2224_s13   ;;  %s4109_s0 = sphi %s4107_s0, %s4108_s0   ;;  %s4105_s21 = sphi %s4103_s21, %s2237_s21   ;;  %s4101_s23 = sphi %s4099_s23, %s2238_s23  }
 0x343   : >> { %2231 = vst [vmem:[%s4101_s23] sm:$0xff] %v2230_v30  ;;  %p2233_p11 = scmp.ge.s32.totalorder %s2232_s18, %s5478_s8  ;;  %p2223_p12 = scmp.ge.s32.totalorder %s2224_s13, %s5478_s8 }
 0x345   : >> { %s5804_s18 = smov (%p2233_p11, %s2232_s18), 0  ;;  %2226 = sbr.rel (!%p2223_p12) target bundleno = 834 (0x342), region = 590 }
 0x346   : >> { %s3008_s25 = sshll.u32 %s5804_s18, 3  ;;  %s4108_s0 = smov %s5804_s18  }
 0x347   : >> { %s2237_s21 = scalar_lea.vmem %s2215_s17, %s3008_s25 [#allocation5]   ;;  %s2238_s23 = scalar_lea.vmem %s2218_s29, %s3008_s25  }
 0x34c PF: > { %2241 = sbr.rel (%p2058_p5) target bundleno = 915 (0x393), region = 287  ;;  %s5490_s27 = ssub.s32 (!%p2058_p5), %s5800_s24, %s5295_s30 }
 0x34d   : > { %s2247_s16 = sshrl.u32 (!%p2058_p5), %s5800_s24, 3  ;;  %s2244_s15 = scalar_lea.vmem (!%p2058_p5), %s5257_s11, %s5490_s27 [#allocation5] }
 0x34e   : > { %s2246_s10 = scalar_lea.vmem (!%p2058_p5), %s5288_s26, %s5490_s27  ;;  %s5499_s9 = sshrl.u32 (!%p2058_p5), %s2247_s16, 6 }
 0x34f   : > { %p3010_p13 = scmp.le.s32.totalorder (!%p2058_p5), %s5499_s9, 0 }
 0x353   : > { %2828 = sbr.rel (%p3010_p13) target bundleno = 891 (0x37b), region = 595  ;;  %s5758_s12 = smov (!%p3010_p13), %s5288_s26 }
 0x354   : > { %s5759_s14 = smov (!%p3010_p13), %s5257_s11  ;;  %s5508_s19 = smov (!%p3010_p13), 0  }
 0x355   : > { %s5510_s28 = smov (!%p3010_p13), 0  }
 0x35a LB: >> { %v2260_v15 = vld [vmem:[%s4121_s14] sm:$0xff]  ;;  %v2262_v16 = vld [vmem:[%s4121_s14 + $0x8] sm:$0xff]  ;;  %v2264_v17 = vld [vmem:[%s4121_s14 + $0x10] sm:$0xff]  ;;  %s2388_s8 = sadd.s32 1, %s4125_s19  ;;  %s2254_s28 = sadd.s32 1, %s4129_s28   ;;  %s4129_s28 = sphi %s5510_s28, %s2254_s28   ;;  %s4125_s19 = sphi %s5508_s19, %s5762_s19   ;;  %s4121_s14 = sphi %s5759_s14, %s5761_s14   ;;  %s4117_s12 = sphi %s5758_s12, %s5760_s12  }
 0x35b   : >> { %2261 = vst [vmem:[%s4117_s12] sm:$0xff] %v2260_v15  ;;  %2263 = vst [vmem:[%s4117_s12 + $0x8] sm:$0xff] %v2262_v16  ;;  %v2266_v18 = vld [vmem:[%s4121_s14 + $0x18] sm:$0xff]  ;;  %v2268_v19 = vld [vmem:[%s4121_s14 + $0x20] sm:$0xff]  ;;  %p2389_p0 = scmp.ge.s32.totalorder %s2388_s8, %s5499_s9  ;;  %p2253_p1 = scmp.ge.s32.totalorder %s2254_s28, %s5499_s9 }
 0x35c   : >> { %2265 = vst [vmem:[%s4117_s12 + $0x10] sm:$0xff] %v2264_v17  ;;  %v2270_v20 = vld [vmem:[%s4121_s14 + $0x28] sm:$0xff]  ;;  %2267 = vst [vmem:[%s4117_s12 + $0x18] sm:$0xff] %v2266_v18  ;;  %v2272_v21 = vld [vmem:[%s4121_s14 + $0x30] sm:$0xff] }
 0x35d   : >> { %2269 = vst [vmem:[%s4117_s12 + $0x20] sm:$0xff] %v2268_v19  ;;  %2271 = vst [vmem:[%s4117_s12 + $0x28] sm:$0xff] %v2270_v20  ;;  %v2274_v22 = vld [vmem:[%s4121_s14 + $0x38] sm:$0xff]  ;;  %v2276_v23 = vld [vmem:[%s4121_s14 + $0x40] sm:$0xff]  ;;  %s5806_s8 = smov (%p2389_p0, %s2388_s8), 0 }
 0x35e   : >> { %2273 = vst [vmem:[%s4117_s12 + $0x30] sm:$0xff] %v2272_v21  ;;  %2275 = vst [vmem:[%s4117_s12 + $0x38] sm:$0xff] %v2274_v22  ;;  %v2278_v28 = vld [vmem:[%s4121_s14 + $0x48] sm:$0xff]  ;;  %v2280_v24 = vld [vmem:[%s4121_s14 + $0x50] sm:$0xff]  ;;  %s3011_s20 = sshll.u32 %s5806_s8, 9  ;;  %s5762_s19 = smov %s5806_s8 }
 0x35f   : >> { %2277 = vst [vmem:[%s4117_s12 + $0x40] sm:$0xff] %v2276_v23  ;;  %v2282_v25 = vld [vmem:[%s4121_s14 + $0x58] sm:$0xff]  ;;  %2279 = vst [vmem:[%s4117_s12 + $0x48] sm:$0xff] %v2278_v28  ;;  %v2284_v26 = vld [vmem:[%s4121_s14 + $0x60] sm:$0xff]  ;;  %s5566_s7 = scalar_lea.vmem %s5257_s11, %s3011_s20 [#allocation5]   ;;  %s5569_s17 = scalar_lea.vmem %s5288_s26, %s3011_s20  }
 0x360   : >> { %2281 = vst [vmem:[%s4117_s12 + $0x50] sm:$0xff] %v2280_v24  ;;  %2283 = vst [vmem:[%s4117_s12 + $0x58] sm:$0xff] %v2282_v25  ;;  %v2286_v27 = vld [vmem:[%s4121_s14 + $0x68] sm:$0xff]  ;;  %v2288_v32 = vld [vmem:[%s4121_s14 + $0x70] sm:$0xff] }
 0x361   : >> { %2285 = vst [vmem:[%s4117_s12 + $0x60] sm:$0xff] %v2284_v26  ;;  %2287 = vst [vmem:[%s4117_s12 + $0x68] sm:$0xff] %v2286_v27  ;;  %v2290_v33 = vld [vmem:[%s4121_s14 + $0x78] sm:$0xff]  ;;  %v2292_v34 = vld [vmem:[%s4121_s14 + $0x80] sm:$0xff] }
 0x362   : >> { %2289 = vst [vmem:[%s4117_s12 + $0x70] sm:$0xff] %v2288_v32  ;;  %v2294_v46 = vld [vmem:[%s4121_s14 + $0x88] sm:$0xff]  ;;  %2291 = vst [vmem:[%s4117_s12 + $0x78] sm:$0xff] %v2290_v33  ;;  %v2296_v35 = vld [vmem:[%s4121_s14 + $0x90] sm:$0xff] }
 0x363   : >> { %2293 = vst [vmem:[%s4117_s12 + $0x80] sm:$0xff] %v2292_v34  ;;  %2295 = vst [vmem:[%s4117_s12 + $0x88] sm:$0xff] %v2294_v46  ;;  %v2298_v36 = vld [vmem:[%s4121_s14 + $0x98] sm:$0xff]  ;;  %v2300_v37 = vld [vmem:[%s4121_s14 + $0xa0] sm:$0xff] }
 0x364   : >> { %2297 = vst [vmem:[%s4117_s12 + $0x90] sm:$0xff] %v2296_v35  ;;  %2299 = vst [vmem:[%s4117_s12 + $0x98] sm:$0xff] %v2298_v36  ;;  %v2302_v39 = vld [vmem:[%s4121_s14 + $0xa8] sm:$0xff]  ;;  %v2304_v47 = vld [vmem:[%s4121_s14 + $0xb0] sm:$0xff] }
 0x365   : >> { %2301 = vst [vmem:[%s4117_s12 + $0xa0] sm:$0xff] %v2300_v37  ;;  %v2306_v40 = vld [vmem:[%s4121_s14 + $0xb8] sm:$0xff]  ;;  %2303 = vst [vmem:[%s4117_s12 + $0xa8] sm:$0xff] %v2302_v39  ;;  %v2308_v41 = vld [vmem:[%s4121_s14 + $0xc0] sm:$0xff] }
 0x366   : >> { %2305 = vst [vmem:[%s4117_s12 + $0xb0] sm:$0xff] %v2304_v47  ;;  %2307 = vst [vmem:[%s4117_s12 + $0xb8] sm:$0xff] %v2306_v40  ;;  %v2310_v42 = vld [vmem:[%s4121_s14 + $0xc8] sm:$0xff]  ;;  %v2312_v43 = vld [vmem:[%s4121_s14 + $0xd0] sm:$0xff] }
 0x367   : >> { %2309 = vst [vmem:[%s4117_s12 + $0xc0] sm:$0xff] %v2308_v41  ;;  %2311 = vst [vmem:[%s4117_s12 + $0xc8] sm:$0xff] %v2310_v42  ;;  %v2314_v45 = vld [vmem:[%s4121_s14 + $0xd8] sm:$0xff]  ;;  %v2316_v48 = vld [vmem:[%s4121_s14 + $0xe0] sm:$0xff] }
 0x368   : >> { %2313 = vst [vmem:[%s4117_s12 + $0xd0] sm:$0xff] %v2312_v43  ;;  %v2318_v49 = vld [vmem:[%s4121_s14 + $0xe8] sm:$0xff]  ;;  %2315 = vst [vmem:[%s4117_s12 + $0xd8] sm:$0xff] %v2314_v45  ;;  %v2320_v50 = vld [vmem:[%s4121_s14 + $0xf0] sm:$0xff] }
 0x369   : >> { %2317 = vst [vmem:[%s4117_s12 + $0xe0] sm:$0xff] %v2316_v48  ;;  %2319 = vst [vmem:[%s4117_s12 + $0xe8] sm:$0xff] %v2318_v49  ;;  %v2322_v51 = vld [vmem:[%s4121_s14 + $0xf8] sm:$0xff]  ;;  %v2324_v52 = vld [vmem:[%s4121_s14 + $0x100] sm:$0xff] }
 0x36a   : >> { %2321 = vst [vmem:[%s4117_s12 + $0xf0] sm:$0xff] %v2320_v50  ;;  %2323 = vst [vmem:[%s4117_s12 + $0xf8] sm:$0xff] %v2322_v51  ;;  %v2326_v53 = vld [vmem:[%s4121_s14 + $0x108] sm:$0xff]  ;;  %v2328_v38 = vld [vmem:[%s4121_s14 + $0x110] sm:$0xff] }
 0x36b   : >> { %2325 = vst [vmem:[%s4117_s12 + $0x100] sm:$0xff] %v2324_v52  ;;  %v2330_v54 = vld [vmem:[%s4121_s14 + $0x118] sm:$0xff]  ;;  %2327 = vst [vmem:[%s4117_s12 + $0x108] sm:$0xff] %v2326_v53  ;;  %v2332_v55 = vld [vmem:[%s4121_s14 + $0x120] sm:$0xff] }
 0x36c   : >> { %2329 = vst [vmem:[%s4117_s12 + $0x110] sm:$0xff] %v2328_v38  ;;  %2331 = vst [vmem:[%s4117_s12 + $0x118] sm:$0xff] %v2330_v54  ;;  %v2334_v56 = vld [vmem:[%s4121_s14 + $0x128] sm:$0xff]  ;;  %v2336_v29 = vld [vmem:[%s4121_s14 + $0x130] sm:$0xff] }
 0x36d   : >> { %2333 = vst [vmem:[%s4117_s12 + $0x120] sm:$0xff] %v2332_v55  ;;  %2335 = vst [vmem:[%s4117_s12 + $0x128] sm:$0xff] %v2334_v56  ;;  %v2338_v57 = vld [vmem:[%s4121_s14 + $0x138] sm:$0xff]  ;;  %v2340_v58 = vld [vmem:[%s4121_s14 + $0x140] sm:$0xff] }
 0x36e   : >> { %2337 = vst [vmem:[%s4117_s12 + $0x130] sm:$0xff] %v2336_v29  ;;  %v2342_v31 = vld [vmem:[%s4121_s14 + $0x148] sm:$0xff]  ;;  %2339 = vst [vmem:[%s4117_s12 + $0x138] sm:$0xff] %v2338_v57  ;;  %v2344_v59 = vld [vmem:[%s4121_s14 + $0x150] sm:$0xff] }
 0x36f   : >> { %2341 = vst [vmem:[%s4117_s12 + $0x140] sm:$0xff] %v2340_v58  ;;  %2343 = vst [vmem:[%s4117_s12 + $0x148] sm:$0xff] %v2342_v31  ;;  %v2346_v60 = vld [vmem:[%s4121_s14 + $0x158] sm:$0xff]  ;;  %v2348_v44 = vld [vmem:[%s4121_s14 + $0x160] sm:$0xff] }
 0x370   : >> { %2345 = vst [vmem:[%s4117_s12 + $0x150] sm:$0xff] %v2344_v59  ;;  %2347 = vst [vmem:[%s4117_s12 + $0x158] sm:$0xff] %v2346_v60  ;;  %v2350_v62 = vld [vmem:[%s4121_s14 + $0x168] sm:$0xff]  ;;  %v2352_v63 = vld [vmem:[%s4121_s14 + $0x170] sm:$0xff] }
 0x371   : >> { %2349 = vst [vmem:[%s4117_s12 + $0x160] sm:$0xff] %v2348_v44  ;;  %v2354_v0 = vld [vmem:[%s4121_s14 + $0x178] sm:$0xff]  ;;  %2351 = vst [vmem:[%s4117_s12 + $0x168] sm:$0xff] %v2350_v62  ;;  %v2356_v1 = vld [vmem:[%s4121_s14 + $0x180] sm:$0xff] }
 0x372   : >> { %2353 = vst [vmem:[%s4117_s12 + $0x170] sm:$0xff] %v2352_v63  ;;  %2355 = vst [vmem:[%s4117_s12 + $0x178] sm:$0xff] %v2354_v0  ;;  %v2358_v2 = vld [vmem:[%s4121_s14 + $0x188] sm:$0xff]  ;;  %v2360_v3 = vld [vmem:[%s4121_s14 + $0x190] sm:$0xff] }
 0x373   : >> { %2357 = vst [vmem:[%s4117_s12 + $0x180] sm:$0xff] %v2356_v1  ;;  %2359 = vst [vmem:[%s4117_s12 + $0x188] sm:$0xff] %v2358_v2  ;;  %v2362_v61 = vld [vmem:[%s4121_s14 + $0x198] sm:$0xff]  ;;  %v2364_v4 = vld [vmem:[%s4121_s14 + $0x1a0] sm:$0xff] }
 0x374   : >> { %2361 = vst [vmem:[%s4117_s12 + $0x190] sm:$0xff] %v2360_v3  ;;  %v2366_v5 = vld [vmem:[%s4121_s14 + $0x1a8] sm:$0xff]  ;;  %2363 = vst [vmem:[%s4117_s12 + $0x198] sm:$0xff] %v2362_v61  ;;  %v2368_v6 = vld [vmem:[%s4121_s14 + $0x1b0] sm:$0xff]  ;;  %2256 = sbr.rel (!%p2253_p1) target bundleno = 858 (0x35a), region = 601 }
 0x375   : >> { %2365 = vst [vmem:[%s4117_s12 + $0x1a0] sm:$0xff] %v2364_v4  ;;  %2367 = vst [vmem:[%s4117_s12 + $0x1a8] sm:$0xff] %v2366_v5  ;;  %v2370_v7 = vld [vmem:[%s4121_s14 + $0x1b8] sm:$0xff]  ;;  %v2372_v8 = vld [vmem:[%s4121_s14 + $0x1c0] sm:$0xff] }
 0x376   : >> { %2369 = vst [vmem:[%s4117_s12 + $0x1b0] sm:$0xff] %v2368_v6  ;;  %2371 = vst [vmem:[%s4117_s12 + $0x1b8] sm:$0xff] %v2370_v7  ;;  %v2374_v9 = vld [vmem:[%s4121_s14 + $0x1c8] sm:$0xff]  ;;  %v2376_v10 = vld [vmem:[%s4121_s14 + $0x1d0] sm:$0xff] }
 0x377   : >> { %2373 = vst [vmem:[%s4117_s12 + $0x1c0] sm:$0xff] %v2372_v8  ;;  %v2378_v11 = vld [vmem:[%s4121_s14 + $0x1d8] sm:$0xff]  ;;  %2375 = vst [vmem:[%s4117_s12 + $0x1c8] sm:$0xff] %v2374_v9  ;;  %v2380_v12 = vld [vmem:[%s4121_s14 + $0x1e0] sm:$0xff] }
 0x378   : >> { %2377 = vst [vmem:[%s4117_s12 + $0x1d0] sm:$0xff] %v2376_v10  ;;  %2379 = vst [vmem:[%s4117_s12 + $0x1d8] sm:$0xff] %v2378_v11  ;;  %v2382_v13 = vld [vmem:[%s4121_s14 + $0x1e8] sm:$0xff]  ;;  %v2384_v14 = vld [vmem:[%s4121_s14 + $0x1f0] sm:$0xff] }
 0x379   : >> { %2381 = vst [vmem:[%s4117_s12 + $0x1e0] sm:$0xff] %v2380_v12  ;;  %2383 = vst [vmem:[%s4117_s12 + $0x1e8] sm:$0xff] %v2382_v13  ;;  %v2386_v30 = vld [vmem:[%s4121_s14 + $0x1f8] sm:$0xff]  ;;  %s5761_s14 = smov %s5566_s7 }
 0x37a   : >> { %2385 = vst [vmem:[%s4117_s12 + $0x1f0] sm:$0xff] %v2384_v14  ;;  %2387 = vst [vmem:[%s4117_s12 + $0x1f8] sm:$0xff] %v2386_v30  ;;  %s5760_s12 = smov %s5569_s17 }
 0x37b PF: > { %s5675_s29 = sand.u32 63, %s2247_s16   ;;  %s3035_s23 = sshll.u32 %s5499_s9, 13 }
 0x37c   : > { %s2399_s21 = sshra.s32 %s3035_s23, 4  ;;  %p3016_p2 = scmp.le.s32.totalorder %s5675_s29, 0 }
 0x37d   : > { %s2400_s0 = scalar_lea.vmem %s5257_s11, %s2399_s21 [#allocation5]   ;;  %s2403_s13 = scalar_lea.vmem %s5288_s26, %s2399_s21  }
 0x37e   : > { %2842 = sbr.rel (%p3016_p2) target bundleno = 911 (0x38f), region = 606  ;;  %s4131_s18 = smov (!%p3016_p2), %s2403_s13  }
 0x37f   : > { %s4135_s25 = smov (!%p3016_p2), %s2400_s0   ;;  %s4139_s8 = smov (!%p3016_p2), 0  }
 0x380   : > { %s4143_s28 = smov (!%p3016_p2), 0  }
 0x385 LB: >> { %v2415_v15 = vld [vmem:[%s4137_s25] sm:$0xff]  ;;  %s2417_s16 = sadd.s32 1, %s4141_s8  ;;  %s2409_s28 = sadd.s32 1, %s4145_s28   ;;  %s4145_s28 = sphi %s4143_s28, %s2409_s28   ;;  %s4141_s8 = sphi %s4139_s8, %s4140_s8   ;;  %s4137_s25 = sphi %s4135_s25, %s2422_s25   ;;  %s4133_s18 = sphi %s4131_s18, %s2423_s18  }
 0x386   : >> { %2416 = vst [vmem:[%s4133_s18] sm:$0xff] %v2415_v15  ;;  %p2418_p3 = scmp.ge.s32.totalorder %s2417_s16, %s5675_s29  ;;  %p2408_p6 = scmp.ge.s32.totalorder %s2409_s28, %s5675_s29 }
 0x388   : >> { %s5808_s16 = smov (%p2418_p3, %s2417_s16), 0  ;;  %2411 = sbr.rel (!%p2408_p6) target bundleno = 901 (0x385), region = 612 }
 0x389   : >> { %s3017_s9 = sshll.u32 %s5808_s16, 3  ;;  %s4140_s8 = smov %s5808_s16  }
 0x38a   : >> { %s2422_s25 = scalar_lea.vmem %s2400_s0, %s3017_s9 [#allocation5]   ;;  %s2423_s18 = scalar_lea.vmem %s2403_s13, %s3017_s9  }
 0x38f PF: > { %s4155_s12 = smov 0  }
 0x390   : > { %s2424_s14 = sshllo.u32 %s4155_s12, %s5295_s30 }
 0x391   : > { %v2433_v16 = vld [vmem:[%s2244_s15] sm:%s2424_s14] }
 0x392   : > { %2434 = vst [vmem:[%s2246_s10] sm:%s2424_s14] %v2433_v16 }
 0x393 PF: > { %p3019_p5 = scmp.ge.u32.totalorder %s5800_s24, 8 }
 0x394   : > { %s4156_s19 = smov (!%p3019_p5), 0  }
 0x395   : > { %2045 = sbr.rel (%p3019_p5) target bundleno = 924 (0x39c), region = 258  ;;  %s2046_s20 = sshllo.u32 (!%p3019_p5), %s4156_s19, %s5800_s24 }
 0x396   : > { %v2055_v17 = vld [vmem:[%s5257_s11] sm:%s2046_s20] (!%p3019_p5) }
 0x397   : > { %2056 = vst [vmem:[%s5288_s26] sm:%s2046_s20] (!%p3019_p5), %v2055_v17 }
 0x39c PF: > { %s5763_s23 = sld [smem:[#allocation6_spill]]  ;;  %s5764_s30 = sld [smem:[#allocation7_spill]] }
 0x39d   : > { %s5765_s21 = smov %s3885_s22 }
 0x3a2   : > { %p14_p7 = scmp.ge.s32.totalorder %s5763_s23, 4   ;;  %s5766_s22 = smov %s5764_s30 }
 0x3a4   :  { %16 = sbr.rel (!%p14_p7) target bundleno = 4 (0x4), region = 623 }

</bundles_post_ra>
